<compile_context>
chip_gen: v5e
topology: v5e:2x2
jax: 0.10.0
libtpu: 0.0.40
codegen_flags: <defaults>
</compile_context>

<pallas_src>
import functools

import jax
import jax.numpy as jnp
from jax import lax
from jax.experimental import pallas as pl
from jax.experimental.pallas import tpu as pltpu

LN_EPS = 1e-5


def _round_up(x, m):
    return -(-x // m) * m


def _pick_tile_n(n_rows, *, max_tile=512, num_cores=2):
    """Balanced row tiles: #tiles is a multiple of num_cores (v7x megacore),
    each tile <= max_tile and a multiple of 8 sublanes, minimizing dead rows
    in the ragged tail (partial blocks still execute the full tile)."""
    tiles = _round_up(max(1, -(-n_rows // max_tile)), num_cores)
    tile = _round_up(-(-n_rows // tiles), 8)
    if tile >= n_rows:
        return n_rows  # single full-array block
    return tile


def _vmem_limit_bytes():
    # ~75% of physical VMEM: 48 MiB on v7x (64 MiB/TC), 96 MiB on v5e/v6e
    # (128 MiB) — leaves headroom for compiler scratch / semaphores.
    try:
        return int(pltpu.get_tpu_info().vmem_capacity_bytes) * 3 // 4
    except Exception:
        return 48 * 1024 * 1024


def _mlp_layer_kernel(hx_ref, w1_ref, b_ref, g_ref, beta_ref, o_ref):
    # hx_ref  : (TN, Hx)  node-feature tile
    # w1_ref  : (Hx, Hx)  linear weight pre-transposed to (in, out), resident
    # b_ref   : (1, Hx)   effective bias = h_t @ W2 + b   (f32)
    # g_ref   : (1, Hx)   LayerNorm gamma (f32)
    # beta_ref: (1, Hx)   LayerNorm beta  (f32)
    # o_ref   : (TN, Hx)
    x = hx_ref[...]
    w = w1_ref[...]
    if x.dtype != w.dtype:
        x = x.astype(w.dtype)  # bf16 MXU feeding when params were prepared in bf16
    prec = lax.Precision.HIGHEST if w.dtype == jnp.float32 else None
    y = jnp.dot(x, w, preferred_element_type=jnp.float32, precision=prec)
    y = y + b_ref[...]
    y = jnp.maximum(y, 0.0)                      # ReLU

    mean = jnp.mean(y, axis=-1, keepdims=True)   # LayerNorm over real Hx lanes
    centered = y - mean
    var = jnp.mean(centered * centered, axis=-1, keepdims=True)
    y = centered * lax.rsqrt(var + LN_EPS)
    y = y * g_ref[...] + beta_ref[...]
    # Dropout: eval-mode identity.
    o_ref[...] = y.astype(o_ref.dtype)


def prepare_mlp_layer_params(w1, w2, b, gamma, beta, *, mxu_dtype=None):
    """One-time parameter preparation (hoisted out of the per-call forward).

    w1: (Hx, Hx), w2: (Ht, Hx) — the nn.Linear weight stored pre-transposed
    (in, out) and split into the h_X / h_t halves.  b/gamma/beta: (1, Hx).
    mxu_dtype: optionally cast W1 (e.g. jnp.bfloat16) for native MXU feeding.
    """
    f32 = jnp.float32
    return dict(
        w1=w1 if mxu_dtype is None else w1.astype(mxu_dtype),
        w2=w2.astype(f32),
        b=b.astype(f32),
        gamma=gamma.astype(f32),
        beta=beta.astype(f32),
    )


@functools.partial(jax.jit, static_argnames=("tile_n",))
def mlp_layer_forward(h_X, h_t, params, tile_n=None):
    """h_X: (N, Hx), h_t: (1, Ht), params from prepare_mlp_layer_params.
    Returns (N, Hx) in h_X's dtype."""
    N, Hx = h_X.shape
    if tile_n is None:
        tile_n = _pick_tile_n(N)
    grid = (pl.cdiv(N, tile_n),)

    # Grid-invariant time-embedding contribution folded into an effective bias.
    # Tiny (1,Ht)@(Ht,Hx); h_t changes per diffusion step so it stays per-call,
    # but it is fused by XLA under this jit.
    eff_bias = (jnp.dot(h_t.astype(jnp.float32), params["w2"],
                        precision=lax.Precision.HIGHEST) + params["b"])

    w1 = params["w1"]
    x_bytes = h_X.dtype.itemsize
    cost = pl.CostEstimate(
        flops=2 * N * Hx * Hx + 10 * N * Hx,
        transcendentals=N,  # one rsqrt per row
        bytes_accessed=(N * Hx * x_bytes                 # h_X read
                        + Hx * Hx * w1.dtype.itemsize    # W1 read (once)
                        + 3 * Hx * 4                     # bias/gamma/beta
                        + N * Hx * x_bytes),             # output write
    )

    # h_X tile stays default double-buffered; bump to pl.Buffered(3) only if
    # profiling shows exposed DMA at very small Hx.
    resident = dict(pipeline_mode=pl.Buffered(1))  # grid-invariant operands

    return pl.pallas_call(
        _mlp_layer_kernel,
        out_shape=jax.ShapeDtypeStruct((N, Hx), h_X.dtype),
        grid_spec=pltpu.PrefetchScalarGridSpec(
            num_scalar_prefetch=0,
            grid=grid,
            in_specs=[
                pl.BlockSpec((tile_n, Hx), lambda i: (i, 0)),         # h_X tile
                pl.BlockSpec((Hx, Hx), lambda i: (0, 0), **resident),  # W1
                pl.BlockSpec((1, Hx), lambda i: (0, 0), **resident),   # eff bias
                pl.BlockSpec((1, Hx), lambda i: (0, 0), **resident),   # gamma
                pl.BlockSpec((1, Hx), lambda i: (0, 0), **resident),   # beta
            ],
            out_specs=pl.BlockSpec((tile_n, Hx), lambda i: (i, 0)),
        ),
        compiler_params=pltpu.CompilerParams(
            dimension_semantics=("parallel",),       # rows split across TCs (v7x)
            vmem_limit_bytes=_vmem_limit_bytes(),
        ),
        cost_estimate=cost,
    )(h_X, w1, eff_bias, params["gamma"], params["beta"])


def reference_forward(h_X, h_t, w1, w2, b, gamma, beta):
    N = h_X.shape[0]
    h_t_expand = jnp.broadcast_to(h_t, (N, h_t.shape[1]))
    h = jnp.concatenate([h_X, h_t_expand], axis=1)
    w_full = jnp.concatenate([w1, w2], axis=0)           # (Hx+Ht, Hx)
    y = jnp.dot(h, w_full, precision=lax.Precision.HIGHEST) + b
    y = jnp.maximum(y, 0.0)
    mean = jnp.mean(y, axis=-1, keepdims=True)
    var = jnp.mean((y - mean) ** 2, axis=-1, keepdims=True)
    y = (y - mean) / jnp.sqrt(var + LN_EPS)
    return y * gamma + beta


if __name__ == "__main__":
    # Module-consistent shapes: N nodes, hidden_X, hidden_t.
    # N=300 -> balanced tiles of 152/148 (both v7x TCs busy, minimal dead rows).
    N, hidden_X, hidden_t = 300, 32, 32

    key = jax.random.PRNGKey(0)
    k_hx, k_ht, k_w, k_b = jax.random.split(key, 4)

    h_X = jax.random.normal(k_hx, (N, hidden_X), dtype=jnp.float32)
    h_t = jax.random.normal(k_ht, (1, hidden_t), dtype=jnp.float32)

    # nn.Linear(hidden_X + hidden_t, hidden_X): weight (out, in), bias (out,)
    # stored pre-transposed as (in, out) and split into the h_X / h_t halves.
    fan_in = hidden_X + hidden_t
    bound = 1.0 / (fan_in ** 0.5)
    w_t = jax.random.uniform(k_w, (fan_in, hidden_X), jnp.float32, -bound, bound)
    w1 = w_t[:hidden_X, :]                                    # (Hx, Hx)
    w2 = w_t[hidden_X:, :]                                    # (Ht, Hx)
    b = jax.random.uniform(k_b, (1, hidden_X), jnp.float32, -bound, bound)

    # LayerNorm affine params (PyTorch default init: ones / zeros).
    gamma = jnp.ones((1, hidden_X), jnp.float32)
    beta = jnp.zeros((1, hidden_X), jnp.float32)

    # One-time parameter preparation (hoisted out of the per-call path).
    params = prepare_mlp_layer_params(w1, w2, b, gamma, beta)

    out = mlp_layer_forward(h_X, h_t, params)
    out = jax.block_until_ready(out)

    ref = reference_forward(h_X, h_t, w1, w2, b, gamma, beta)
    assert out.shape == (N, hidden_X)
    assert jnp.allclose(out, ref, atol=1e-4, rtol=1e-4), "mismatch vs reference"

    print("KERNEL_OK")
</pallas_src>

<mosaic_0001>
module attributes {stable_mosaic.version = 11 : i64} {
  func.func @_mlp_layer_kernel(%arg0: i32, %arg1: memref<152x32xf32, #tpu.memory_space<vmem>>, %arg2: memref<32x32xf32, #tpu.memory_space<vmem>>, %arg3: memref<1x32xf32, #tpu.memory_space<vmem>>, %arg4: memref<1x32xf32, #tpu.memory_space<vmem>>, %arg5: memref<1x32xf32, #tpu.memory_space<vmem>>, %arg6: memref<152x32xf32, #tpu.memory_space<vmem>>) attributes {dimension_semantics = [#tpu.dimension_semantics<parallel>], iteration_bounds = array<i64: 2>, scalar_prefetch = 0 : i64, scratch_operands = 0 : i64, tpu.core_type = #tpu.core_type<tc>, window_params = [{transform_indices = @transform_0, window_bounds = array<i64: 152, 32>}, {pipeline_mode = #tpu.pipeline_mode<synchronous>, transform_indices = @transform_1, window_bounds = array<i64: 32, 32>}, {pipeline_mode = #tpu.pipeline_mode<synchronous>, transform_indices = @transform_2, window_bounds = array<i64: 1, 32>}, {pipeline_mode = #tpu.pipeline_mode<synchronous>, transform_indices = @transform_3, window_bounds = array<i64: 1, 32>}, {pipeline_mode = #tpu.pipeline_mode<synchronous>, transform_indices = @transform_4, window_bounds = array<i64: 1, 32>}, {transform_indices = @transform_5, window_bounds = array<i64: 152, 32>}]} {
    %c0 = arith.constant 0 : index
    %c0_0 = arith.constant 0 : index
    %0 = vector.load %arg1[%c0, %c0_0] : memref<152x32xf32, #tpu.memory_space<vmem>>, vector<152x32xf32>
    %c0_1 = arith.constant 0 : index
    %c0_2 = arith.constant 0 : index
    %1 = vector.load %arg2[%c0_1, %c0_2] : memref<32x32xf32, #tpu.memory_space<vmem>>, vector<32x32xf32>
    %cst = arith.constant dense<0.000000e+00> : vector<152x32xf32>
    %2 = tpu.matmul %0, %1, %cst {dimension_numbers = #tpu.dot_dimension_numbers<[1], [0], [0], [1], [0, 0, 1, 1], [], []>, precision = #tpu.contract_precision<fp32>} : vector<152x32xf32>, vector<32x32xf32>, vector<152x32xf32> -> vector<152x32xf32>
    %c0_3 = arith.constant 0 : index
    %c0_4 = arith.constant 0 : index
    %3 = vector.load %arg3[%c0_3, %c0_4] : memref<1x32xf32, #tpu.memory_space<vmem>>, vector<1x32xf32>
    %4 = vector.broadcast %3 : vector<1x32xf32> to vector<152x32xf32>
    %5 = arith.addf %2, %4 : vector<152x32xf32>
    %cst_5 = arith.constant 0.000000e+00 : f32
    %6 = vector.broadcast %cst_5 : f32 to vector<152x32xf32>
    %7 = arith.maximumf %5, %6 : vector<152x32xf32>
    %cst_6 = arith.constant dense<0.000000e+00> : vector<152xf32>
    %8 = vector.multi_reduction <add>, %7, %cst_6 [1] : vector<152x32xf32> to vector<152xf32>
    %9 = vector.shape_cast %8 : vector<152xf32> to vector<152x1xf32>
    %cst_7 = arith.constant 3.200000e+01 : f32
    %10 = vector.broadcast %cst_7 : f32 to vector<152x1xf32>
    %11 = arith.divf %9, %10 : vector<152x1xf32>
    %12 = vector.broadcast %11 : vector<152x1xf32> to vector<152x32xf32>
    %13 = arith.subf %7, %12 : vector<152x32xf32>
    %14 = arith.mulf %13, %13 : vector<152x32xf32>
    %cst_8 = arith.constant dense<0.000000e+00> : vector<152xf32>
    %15 = vector.multi_reduction <add>, %14, %cst_8 [1] : vector<152x32xf32> to vector<152xf32>
    %16 = vector.shape_cast %15 : vector<152xf32> to vector<152x1xf32>
    %cst_9 = arith.constant 3.200000e+01 : f32
    %17 = vector.broadcast %cst_9 : f32 to vector<152x1xf32>
    %18 = arith.divf %16, %17 : vector<152x1xf32>
    %cst_10 = arith.constant 9.99999974E-6 : f32
    %19 = vector.broadcast %cst_10 : f32 to vector<152x1xf32>
    %20 = arith.addf %18, %19 : vector<152x1xf32>
    %21 = math.rsqrt %20 : vector<152x1xf32>
    %22 = vector.broadcast %21 : vector<152x1xf32> to vector<152x32xf32>
    %23 = arith.mulf %13, %22 : vector<152x32xf32>
    %c0_11 = arith.constant 0 : index
    %c0_12 = arith.constant 0 : index
    %24 = vector.load %arg4[%c0_11, %c0_12] : memref<1x32xf32, #tpu.memory_space<vmem>>, vector<1x32xf32>
    %25 = vector.broadcast %24 : vector<1x32xf32> to vector<152x32xf32>
    %26 = arith.mulf %23, %25 : vector<152x32xf32>
    %c0_13 = arith.constant 0 : index
    %c0_14 = arith.constant 0 : index
    %27 = vector.load %arg5[%c0_13, %c0_14] : memref<1x32xf32, #tpu.memory_space<vmem>>, vector<1x32xf32>
    %28 = vector.broadcast %27 : vector<1x32xf32> to vector<152x32xf32>
    %29 = arith.addf %26, %28 : vector<152x32xf32>
    %c0_15 = arith.constant 0 : index
    %c0_16 = arith.constant 0 : index
    %30 = vector.load %arg6[%c0_15, %c0_16] : memref<152x32xf32, #tpu.memory_space<vmem>>, vector<152x32xf32>
    tpu.vector_store %arg6[%c0_15, %c0_16], %29 {strides = array<i32>} : memref<152x32xf32, #tpu.memory_space<vmem>>, vector<152x32xf32>,
    return
  }
  func.func @transform_0(%arg0: i32) -> (i32, i32) {
    %c0_i32 = arith.constant 0 : i32
    %c0_i32_0 = arith.constant 0 : i32
    return %arg0, %c0_i32 : i32, i32
  }
  func.func @transform_1(%arg0: i32) -> (i32, i32) {
    %c0_i32 = arith.constant 0 : i32
    %c0_i32_0 = arith.constant 0 : i32
    %c0_i32_1 = arith.constant 0 : i32
    return %c0_i32, %c0_i32_0 : i32, i32
  }
  func.func @transform_2(%arg0: i32) -> (i32, i32) {
    %c0_i32 = arith.constant 0 : i32
    %c0_i32_0 = arith.constant 0 : i32
    %c0_i32_1 = arith.constant 0 : i32
    return %c0_i32, %c0_i32_0 : i32, i32
  }
  func.func @transform_3(%arg0: i32) -> (i32, i32) {
    %c0_i32 = arith.constant 0 : i32
    %c0_i32_0 = arith.constant 0 : i32
    %c0_i32_1 = arith.constant 0 : i32
    return %c0_i32, %c0_i32_0 : i32, i32
  }
  func.func @transform_4(%arg0: i32) -> (i32, i32) {
    %c0_i32 = arith.constant 0 : i32
    %c0_i32_0 = arith.constant 0 : i32
    %c0_i32_1 = arith.constant 0 : i32
    return %c0_i32, %c0_i32_0 : i32, i32
  }
  func.func @transform_5(%arg0: i32) -> (i32, i32) {
    %c0_i32 = arith.constant 0 : i32
    %c0_i32_0 = arith.constant 0 : i32
    return %arg0, %c0_i32 : i32, i32
  }
}

</mosaic_0001>

<bundles_post_ra>
// kernel: mlp_layer_forward.1
= control target key start
LH: loop header
LB: loop body
LE: loop exit
PB: predicated region body
PF: predicated region fallthrough
CT: control target
= control target key end

     0   :  { %s1729_s18 = smov 0   ;;  %s2591_s0 = inlined_call_operand.vmem [shape: f32[300,32], index: 0, kind: input, shape index: {}]   ;;  %s2592_s1 = inlined_call_operand.vmem [shape: f32[32,32], index: 1, kind: input, shape index: {}]   ;;  %s2593_s2 = inlined_call_operand.vmem [shape: f32[1,32], index: 2, kind: input, shape index: {}]   ;;  %s2594_s3 = inlined_call_operand.vmem [shape: f32[1,32], index: 3, kind: input, shape index: {}]   ;;  %s2595_s4 = inlined_call_operand.vmem [shape: f32[1,32], index: 4, kind: input, shape index: {}]   ;;  %s2596_s5 = inlined_call_operand.vmem [shape: f32[300,32], index: 5, kind: output, shape index: {}]  }
   0x1 LB: > { %s1621_s19 = sadd.s32 4294967295, %s1696_s18   ;;  %p1625_p0 = scmp.ge.s32.totalorder %s1696_s18, 1  ;;  %s1696_s18 = sphi %s1729_s18, %s15_s18  }
   0x2   : > { %p188_p1 = scmp.lt.s32.totalorder %s1696_s18, 3 }
   0x4   : > { %p189_p2 = pnand %p1625_p0, %p188_p1 }
   0x5   : > { %s216_s26 = smul.u32 (!%p189_p2), 19, %s1621_s19 }
   0x6   : > { %192 = sbr.rel (%p189_p2) target bundleno = 659 (0x293), region = 40 }
   0x7   : > { %p217_p3 = scmp.lt.s32.totalorder (!%p189_p2), %s216_s26, 37 }
   0xb   : > { %v250_v0 = vld [vmem:[%s2592_s1 + $0x18] sm:$0xff]  ;;  %v249_v1 = vld [vmem:[%s2592_s1 + $0x10] sm:$0xff]  ;;  %v248_v2 = vld [vmem:[%s2592_s1 + $0x8] sm:$0xff]  ;;  %s2600_s26 = smov (!%p217_p3, %s216_s26), 37  ;;  %vm255_vm0 = vcmask 261120  }
   0xc   : > { %v1746_v3 = vand.u32 4294901760, %v250_v0  ;;  %v1748_v4 = vand.u32 4294901760, %v249_v1  ;;  %v1750_v5 = vand.u32 4294901760, %v248_v2  ;;  %v247_v6 = vld [vmem:[%s2592_s1] sm:$0xff]  ;;  %s1626_s29 = sshll.u32 %s2600_s26, 3 }
   0xd   : > { %v1755_v7 = vand.u32 4294901760, %v247_v6  ;;  %s1775_s7 = scalar_lea.vmem %s2591_s0, %s1626_s29  ;;  %s2474_s16 = scalar_lea.vmem %s2596_s5, %s1626_s29 }
   0xe   : > { %1630 = vmatpush.msra.mxu2 %v1746_v3  ;;  %326 = vmatpush.msra.mxu0 %v1746_v3  ;;  %v499_v8 = vsub.f32 %v250_v0, %v1746_v3  ;;  %v505_v9 = vsub.f32 %v249_v1, %v1748_v4  ;;  %v511_v10 = vsub.f32 %v248_v2, %v1750_v5  ;;  %v238_v19 = vld [vmem:[%s1775_s7 + $0x50] sm:$0xff]  ;;  %v228_v20 = vld [vmem:[%s1775_s7] sm:$0xff]  ;;  %v239_v21 = vld [vmem:[%s1775_s7 + $0x58] sm:$0xff] }
   0xf   : > { %v517_v11 = vsub.f32 %v247_v6, %v1755_v7  ;;  %v287_v24 = vsel %vm255_vm0, %v238_v19, 0  ;;  %v229_v26 = vld [vmem:[%s1775_s7 + $0x8] sm:$0xff]  ;;  %v257_v28 = vsel %vm255_vm0, %v228_v20, 0  ;;  %v290_v29 = vsel %vm255_vm0, %v239_v21, 0  ;;  %v240_v30 = vld [vmem:[%s1775_s7 + $0x60] sm:$0xff]  ;;  %v230_v35 = vld [vmem:[%s1775_s7 + $0x10] sm:$0xff] }
  0x10   : > { %1631 = vmatpush.msra.mxu2 %v1748_v4  ;;  %v500_v12 = vand.u32 4294901760, %v499_v8  ;;  %328 = vmatpush.msra.mxu0 %v1748_v4  ;;  %v506_v13 = vand.u32 4294901760, %v505_v9  ;;  %v512_v14 = vand.u32 4294901760, %v511_v10  ;;  %v1784_v27 = vand.u32 4294901760, %v287_v24  ;;  %v241_v53 = vld [vmem:[%s1775_s7 + $0x68] sm:$0xff]  ;;  %v231_v55 = vld [vmem:[%s1775_s7 + $0x18] sm:$0xff] }
  0x11   : > { %v518_v15 = vand.u32 4294901760, %v517_v11  ;;  %v1789_v32 = vand.u32 4294901760, %v257_v28  ;;  %v1791_v33 = vand.u32 4294901760, %v290_v29  ;;  %v260_v34 = vsel %vm255_vm0, %v229_v26, 0  ;;  %v232_v6 = vld [vmem:[%s1775_s7 + $0x20] sm:$0xff]  ;;  %v233_v19 = vld [vmem:[%s1775_s7 + $0x28] sm:$0xff] }
  0x12   : > { %v501_v16 = vsub.f32 %v499_v8, %v500_v12  ;;  %1632 = vmatpush.msra.mxu2 %v1750_v5  ;;  %v507_v17 = vsub.f32 %v505_v9, %v506_v13  ;;  %330 = vmatpush.msra.mxu0 %v1750_v5  ;;  %v513_v18 = vsub.f32 %v511_v10, %v512_v14  ;;  %v1798_v37 = vand.u32 4294901760, %v260_v34 }
  0x13   : > { %v519_v25 = vsub.f32 %v517_v11, %v518_v15  ;;  %v1796_v36 = vsub.f32 %v287_v24, %v1784_v27  ;;  %v1801_v39 = vsub.f32 %v257_v28, %v1789_v32  ;;  %v1804_v40 = vsub.f32 %v290_v29, %v1791_v33 }
  0x14   : > { %v502_v22 = vand.u32 4294901760, %v501_v16  ;;  %v508_v23 = vand.u32 4294901760, %v507_v17  ;;  %1633 = vmatpush.msra.mxu2 %v1755_v7  ;;  %332 = vmatpush.msra.mxu0 %v1755_v7  ;;  %v514_v31 = vand.u32 4294901760, %v513_v18  ;;  %v293_v41 = vsel %vm255_vm0, %v240_v30, 0  ;;  %v243_v18 = vld [vmem:[%s1775_s7 + $0x78] sm:$0xff] }
  0x15   : > { %v520_v38 = vand.u32 4294901760, %v519_v25  ;;  %v415_v42 = vand.u32 4294901760, %v1796_v36  ;;  %v1809_v43 = vsub.f32 %v260_v34, %v1798_v37  ;;  %v263_v44 = vsel %vm255_vm0, %v230_v35, 0  ;;  %v244_v35 = vld [vmem:[%s1775_s7 + $0x80] sm:$0xff] }
  0x16   : > { %613 = vmatpush.msrb.mxu2 %v499_v8  ;;  %869 = vmatpush.msrb.mxu0 %v500_v12  ;;  %v335_v45 = vand.u32 4294901760, %v1801_v39  ;;  %v423_v47 = vand.u32 4294901760, %v1804_v40  ;;  %v1817_v48 = vand.u32 4294901760, %v293_v41  ;;  %v1823_v51 = vand.u32 4294901760, %v263_v44 }
  0x17   : > { %1634 = vmatpush.msra.mxu3 %v502_v22  ;;  %503 = vmatpush.msra.mxu1 %v502_v22  ;;  %v416_v46 = vsub.f32 %v1796_v36, %v415_v42  ;;  %v343_v50 = vand.u32 4294901760, %v1809_v43  ;;  %v296_v60 = vsel %vm255_vm0, %v241_v53, 0  ;;  %v266_v61 = vsel %vm255_vm0, %v231_v55, 0 }
  0x18   : > { %616 = vmatpush.msrb.mxu2 %v505_v9  ;;  %873 = vmatpush.msrb.mxu0 %v506_v13  ;;  %v336_v49 = vsub.f32 %v1801_v39, %v335_v45  ;;  %v424_v56 = vsub.f32 %v1804_v40, %v423_v47  ;;  %v1835_v57 = vsub.f32 %v293_v41, %v1817_v48  ;;  %v1849_v0 = vand.u32 4294901760, %v296_v60 }
  0x19   : > { %1635 = vmatpush.msra.mxu3 %v508_v23  ;;  %509 = vmatpush.msra.mxu1 %v508_v23  ;;  %v417_v52 = vand.u32 4294901760, %v416_v46  ;;  %v344_v58 = vsub.f32 %v1809_v43, %v343_v50  ;;  %v1841_v59 = vsub.f32 %v263_v44, %v1823_v51  ;;  %v302_v24 = vsel %vm255_vm0, %v243_v18, 0 }
  0x1a   : > { %619 = vmatpush.msrb.mxu2 %v511_v10  ;;  %877 = vmatpush.msrb.mxu0 %v512_v14  ;;  %v337_v54 = vand.u32 4294901760, %v336_v49  ;;  %v425_v62 = vand.u32 4294901760, %v424_v56  ;;  %v431_v63 = vand.u32 4294901760, %v1835_v57  ;;  %v1865_v8 = vsub.f32 %v296_v60, %v1849_v0 }
  0x1b   : > { %1636 = vmatpush.msra.mxu3 %v514_v31  ;;  %515 = vmatpush.msra.mxu1 %v514_v31  ;;  %v345_v1 = vand.u32 4294901760, %v344_v58  ;;  %v351_v2 = vand.u32 4294901760, %v1841_v59  ;;  %v272_v25 = vsel %vm255_vm0, %v233_v19, 0  ;;  %v1900_v29 = vand.u32 4294901760, %v302_v24 }
  0x1c   : > { %622 = vmatpush.msrb.mxu2 %v517_v11  ;;  %881 = vmatpush.msrb.mxu0 %v518_v15  ;;  %v269_v11 = vsel %vm255_vm0, %v232_v6, 0  ;;  %v439_v13 = vand.u32 4294901760, %v1865_v8  ;;  %v1903_v34 = vand.u32 4294901760, %v272_v25 }
  0x1d   : > { %1637 = vmatpush.msra.mxu3 %v520_v38  ;;  %521 = vmatpush.msra.mxu1 %v520_v38  ;;  %v352_v9 = vsub.f32 %v1841_v59, %v351_v2  ;;  %v1879_v17 = vand.u32 4294901760, %v269_v11  ;;  %v234_v38 = vld [vmem:[%s1775_s7 + $0x30] sm:$0xff]  ;;  %v1913_v44 = vsub.f32 %v302_v24, %v1900_v29 }
  0x1e   : > { %563 = vmatmul.f32.vlgmr.msra.gmra.mxu3 %v1784_v27  ;;  %523 = vmatmul.f32.vlgmr.msra.gmra.mxu1 %v1789_v32  ;;  %v440_v20 = vsub.f32 %v1865_v8, %v439_v13  ;;  %v1919_v49 = vsub.f32 %v272_v25, %v1903_v34  ;;  %v275_v53 = vsel %vm255_vm0, %v234_v38, 0  ;;  %v246_v24 = vld [vmem:[%s1775_s7 + $0x90] sm:$0xff]  ;;  %v236_v25 = vld [vmem:[%s1775_s7 + $0x40] sm:$0xff] }
  0x1f   : > { %732 = vmatpush.msrb.mxu3 %v1746_v3  ;;  %972 = vmatpush.msrb.mxu1 %v1746_v3  ;;  %v1853_v3 = vand.u32 4294901760, %v266_v61  ;;  %v353_v15 = vand.u32 4294901760, %v352_v9  ;;  %v1895_v23 = vsub.f32 %v269_v11, %v1879_v17  ;;  %v455_v55 = vand.u32 4294901760, %v1913_v44 }
  0x20   : > { %418 = vmatmul.f32.vlgmr.msra.gmra.mxu2 %v417_v52  ;;  %338 = vmatmul.f32.vlgmr.msra.gmra.mxu0 %v337_v54  ;;  %v441_v26 = vand.u32 4294901760, %v440_v20  ;;  %v305_v52 = vsel %vm255_vm0, %v244_v35, 0  ;;  %v375_v60 = vand.u32 4294901760, %v1919_v49 }
  0x21   : > { %734 = vmatpush.msrb.mxu3 %v1748_v4  ;;  %974 = vmatpush.msrb.mxu1 %v1748_v4  ;;  %v242_v4 = vld [vmem:[%s1775_s7 + $0x70] sm:$0xff]  ;;  %v1871_v10 = vsub.f32 %v266_v61, %v1853_v3  ;;  %v367_v31 = vand.u32 4294901760, %v1895_v23  ;;  %v1924_v56 = vand.u32 4294901760, %v305_v52  ;;  %v1927_v61 = vand.u32 4294901760, %v275_v53 }
  0x23   : > { %736 = vmatpush.msrb.mxu3 %v1750_v5  ;;  %976 = vmatpush.msrb.mxu1 %v1750_v5  ;;  %v432_v5 = vsub.f32 %v1835_v57, %v431_v63  ;;  %v359_v16 = vand.u32 4294901760, %v1871_v10  ;;  %v368_v46 = vsub.f32 %v1895_v23, %v367_v31  ;;  %v1937_v6 = vsub.f32 %v305_v52, %v1924_v56 }
  0x24   : > { %v1943_v9 = vsub.f32 %v275_v53, %v1927_v61 }
  0x25   : > { %738 = vmatpush.msrb.mxu3 %v1755_v7  ;;  %978 = vmatpush.msrb.mxu1 %v1755_v7  ;;  %v299_v7 = vsel %vm255_vm0, %v242_v4, 0  ;;  %v433_v12 = vand.u32 4294901760, %v432_v5  ;;  %v360_v22 = vsub.f32 %v1871_v10, %v359_v16  ;;  %v369_v58 = vand.u32 4294901760, %v368_v46 }
  0x26   : > { %567 = vmatmul.f32.gmra.mxu3 %v1791_v33  ;;  %527 = vmatmul.f32.gmra.mxu1 %v1798_v37  ;;  %v1876_v14 = vand.u32 4294901760, %v299_v7  ;;  %v456_v4 = vsub.f32 %v1913_v44, %v455_v55  ;;  %v376_v5 = vsub.f32 %v1919_v49, %v375_v60  ;;  %v383_v20 = vand.u32 4294901760, %v1943_v9 }
  0x27   : > { %v361_v30 = vand.u32 4294901760, %v360_v22  ;;  %v281_v46 = vsel %vm255_vm0, %v236_v25, 0 }
  0x28   : > { %426 = vmatmul.f32.gmra.mxu2 %v425_v62  ;;  %346 = vmatmul.f32.gmra.mxu0 %v345_v1  ;;  %v1889_v21 = vsub.f32 %v299_v7, %v1876_v14  ;;  %v245_v62 = vld [vmem:[%s1775_s7 + $0x88] sm:$0xff]  ;;  %v235_v1 = vld [vmem:[%s1775_s7 + $0x38] sm:$0xff]  ;;  %v377_v19 = vand.u32 4294901760, %v376_v5  ;;  %v384_v35 = vsub.f32 %v1943_v9, %v383_v20 }
  0x29   : > { %v308_v7 = vsel %vm255_vm0, %v245_v62, 0  ;;  %v278_v11 = vsel %vm255_vm0, %v235_v1, 0  ;;  %v1975_v1 = vand.u32 4294901760, %v281_v46 }
  0x2a   : > { %v447_v28 = vand.u32 4294901760, %v1889_v21  ;;  %v1948_v18 = vand.u32 4294901760, %v308_v7  ;;  %v1951_v22 = vand.u32 4294901760, %v278_v11 }
  0x2c   : > { %v448_v41 = vsub.f32 %v1889_v21, %v447_v28  ;;  %v1967_v38 = vsub.f32 %v278_v11, %v1951_v22 }
  0x2e   : > { %571 = vmatmul.f32.gmra.mxu3 %v1817_v48  ;;  %531 = vmatmul.f32.gmra.mxu1 %v1823_v51  ;;  %v449_v54 = vand.u32 4294901760, %v448_v41  ;;  %v311_v41 = vsel %vm255_vm0, %v246_v24, 0  ;;  %v391_v62 = vand.u32 4294901760, %v1967_v38 }
  0x30   : > { %434 = vmatmul.f32.gmra.mxu2 %v433_v12  ;;  %354 = vmatmul.f32.gmra.mxu0 %v353_v15  ;;  %v457_v12 = vand.u32 4294901760, %v456_v4  ;;  %v463_v15 = vand.u32 4294901760, %v1937_v6  ;;  %v237_v4 = vld [vmem:[%s1775_s7 + $0x48] sm:$0xff]  ;;  %v392_v11 = vsub.f32 %v1967_v38, %v391_v62 }
  0x36   : > { %575 = vmatmul.f32.gmra.mxu3 %v1849_v0  ;;  %535 = vmatmul.f32.gmra.mxu1 %v1853_v3 }
  0x38   : > { %442 = vmatmul.f32.gmra.mxu2 %v441_v26  ;;  %362 = vmatmul.f32.gmra.mxu0 %v361_v30  ;;  %v464_v26 = vsub.f32 %v1937_v6, %v463_v15  ;;  %v1961_v30 = vsub.f32 %v308_v7, %v1948_v18 }
  0x3a   : > { %v465_v52 = vand.u32 4294901760, %v464_v26  ;;  %v2597_v53 = vand.u32 4294901760, %v1961_v30  ;;  %v393_v26 = vand.u32 4294901760, %v392_v11 }
  0x3c   : > { %v472_v5 = vsub.f32 %v1961_v30, %v2597_v53 }
  0x3e   : > { %579 = vmatmul.f32.gmra.mxu3 %v1876_v14  ;;  %539 = vmatmul.f32.gmra.mxu1 %v1879_v17  ;;  %v473_v24 = vand.u32 4294901760, %v472_v5 }
  0x40   : > { %450 = vmatmul.f32.gmra.mxu2 %v449_v54  ;;  %370 = vmatmul.f32.gmra.mxu0 %v369_v58  ;;  %v1972_v54 = vand.u32 4294901760, %v311_v41  ;;  %v385_v58 = vand.u32 4294901760, %v384_v35 }
  0x42   : > { %v1984_v7 = vsub.f32 %v311_v41, %v1972_v54 }
  0x44   : > { %v479_v25 = vand.u32 4294901760, %v1984_v7 }
  0x46   : > { %583 = vmatmul.f32.gmra.mxu3 %v1900_v29  ;;  %543 = vmatmul.f32.gmra.mxu1 %v1903_v34  ;;  %v480_v41 = vsub.f32 %v1984_v7, %v479_v25 }
  0x48   : > { %458 = vmatmul.f32.gmra.mxu2 %v457_v12  ;;  %378 = vmatmul.f32.gmra.mxu0 %v377_v19  ;;  %v1988_v12 = vsub.f32 %v281_v46, %v1975_v1  ;;  %v284_v19 = vsel %vm255_vm0, %v237_v4, 0  ;;  %v481_v4 = vand.u32 4294901760, %v480_v41 }
  0x4a   : > { %v399_v35 = vand.u32 4294901760, %v1988_v12 }
  0x4c   : > { %v400_v46 = vsub.f32 %v1988_v12, %v399_v35 }
  0x4e   : > { %587 = vmatmul.f32.gmra.mxu3 %v1924_v56  ;;  %547 = vmatmul.f32.gmra.mxu1 %v1927_v61  ;;  %v401_v5 = vand.u32 4294901760, %v400_v46 }
  0x50   : > { %466 = vmatmul.f32.gmra.mxu2 %v465_v52  ;;  %386 = vmatmul.f32.gmra.mxu0 %v385_v58  ;;  %v1993_v52 = vand.u32 4294901760, %v284_v19 }
  0x52   : > { %v406_v58 = vsub.f32 %v284_v19, %v1993_v52 }
  0x54   : > { %v407_v11 = vand.u32 4294901760, %v406_v58 }
  0x56   : > { %591 = vmatmul.f32.gmra.mxu3 %v1948_v18  ;;  %551 = vmatmul.f32.gmra.mxu1 %v1951_v22  ;;  %v408_v53 = vsub.f32 %v406_v58, %v407_v11 }
  0x58   : > { %474 = vmatmul.f32.gmra.mxu2 %v473_v24  ;;  %394 = vmatmul.f32.gmra.mxu0 %v393_v26  ;;  %v409_v24 = vand.u32 4294901760, %v408_v53 }
  0x5e   : > { %595 = vmatmul.f32.gmra.mxu3 %v1972_v54  ;;  %555 = vmatmul.f32.gmra.mxu1 %v1975_v1 }
  0x60   : > { %482 = vmatmul.f32.gmra.mxu2 %v481_v4  ;;  %402 = vmatmul.f32.gmra.mxu0 %v401_v5 }
  0x66   : > { %742 = vmatmul.f32.vlgmr.msrb.gmra.mxu3 %v335_v45  ;;  %559 = vmatmul.f32.gmra.mxu1 %v1993_v52 }
  0x68   : > { %625 = vmatmul.f32.vlgmr.msrb.gmra.mxu2 %v1801_v39  ;;  %410 = vmatmul.f32.gmra.mxu0 %v409_v24 }
  0x6e   : > { %748 = vmatmul.f32.gmra.mxu3 %v343_v50  ;;  %980 = vmatmul.f32.vlgmr.msrb.gmra.mxu1 %v1789_v32 }
  0x70   : > { %630 = vmatmul.f32.gmra.mxu2 %v1809_v43  ;;  %883 = vmatmul.f32.vlgmr.msrb.gmra.mxu0 %v1789_v32  ;;  %v2048_v43 = vld [vmem:[%s2593_s2] ss:$0 sm:$0xff] }
  0x76   : > { %754 = vmatmul.f32.gmra.mxu3 %v351_v2  ;;  %984 = vmatmul.f32.gmra.mxu1 %v1798_v37 }
  0x78   : > { %635 = vmatmul.f32.gmra.mxu2 %v1841_v59  ;;  %887 = vmatmul.f32.gmra.mxu0 %v1798_v37 }
  0x7e   : > { %760 = vmatmul.f32.gmra.mxu3 %v359_v16  ;;  %988 = vmatmul.f32.gmra.mxu1 %v1823_v51 }
  0x80   : > { %640 = vmatmul.f32.gmra.mxu2 %v1871_v10  ;;  %891 = vmatmul.f32.gmra.mxu0 %v1823_v51 }
  0x86   : > { %766 = vmatmul.f32.gmra.mxu3 %v367_v31  ;;  %992 = vmatmul.f32.gmra.mxu1 %v1853_v3 }
  0x88   : > { %645 = vmatmul.f32.gmra.mxu2 %v1895_v23  ;;  %895 = vmatmul.f32.gmra.mxu0 %v1853_v3 }
  0x8e   : > { %772 = vmatmul.f32.gmra.mxu3 %v375_v60  ;;  %996 = vmatmul.f32.gmra.mxu1 %v1879_v17 }
  0x90   : > { %650 = vmatmul.f32.gmra.mxu2 %v1919_v49  ;;  %899 = vmatmul.f32.gmra.mxu0 %v1879_v17 }
  0x96   : > { %778 = vmatmul.f32.gmra.mxu3 %v383_v20  ;;  %1000 = vmatmul.f32.gmra.mxu1 %v1903_v34 }
  0x98   : > { %655 = vmatmul.f32.gmra.mxu2 %v1943_v9  ;;  %903 = vmatmul.f32.gmra.mxu0 %v1903_v34 }
  0x9b   : > { %v2038_v32 = vpop.f32.mrf.mxu1 }
  0x9d   : > { %v2040_v37 = vpop.f32.mrf.mxu0 }
  0x9e   : > { %784 = vmatmul.f32.gmra.mxu3 %v391_v62  ;;  %1004 = vmatmul.f32.gmra.mxu1 %v1927_v61 }
  0xa0   : > { %660 = vmatmul.f32.gmra.mxu2 %v1967_v38  ;;  %907 = vmatmul.f32.gmra.mxu0 %v1927_v61 }
  0xa1   : > { %v564_v39 = vpop.f32.mrf.mxu3 }
  0xa3   : > { %v419_v45 = vpop.f32.mrf.mxu2  ;;  %v2050_v50 = vpop.f32.mrf.mxu1 }
  0xa4   : > { %v420_v51 = vadd.f32 %v2048_v43, %v419_v45 }
  0xa5   : > { %v2055_v2 = vpop.f32.mrf.mxu0 }
  0xa6   : > { %v2053_v59 = vadd.f32 %v564_v39, %v420_v51  ;;  %790 = vmatmul.f32.gmra.mxu3 %v399_v35  ;;  %1008 = vmatmul.f32.gmra.mxu1 %v1951_v22 }
  0xa8   : > { %665 = vmatmul.f32.gmra.mxu2 %v1988_v12  ;;  %911 = vmatmul.f32.gmra.mxu0 %v1951_v22 }
  0xa9   : > { %v568_v3 = vpop.f32.mrf.mxu3 }
  0xab   : > { %v427_v10 = vpop.f32.mrf.mxu2  ;;  %v2060_v16 = vpop.f32.mrf.mxu1 }
  0xac   : > { %v428_v17 = vadd.f32 %v2048_v43, %v427_v10 }
  0xad   : > { %v2065_v31 = vpop.f32.mrf.mxu0 }
  0xae   : > { %v2063_v23 = vadd.f32 %v568_v3, %v428_v17  ;;  %796 = vmatmul.f32.gmra.mxu3 %v407_v11  ;;  %1012 = vmatmul.f32.gmra.mxu1 %v1975_v1 }
  0xb0   : > { %670 = vmatmul.f32.gmra.mxu2 %v406_v58  ;;  %915 = vmatmul.f32.gmra.mxu0 %v1975_v1 }
  0xb1   : > { %v572_v34 = vpop.f32.mrf.mxu3 }
  0xb3   : > { %v435_v49 = vpop.f32.mrf.mxu2  ;;  %v2069_v60 = vpop.f32.mrf.mxu1 }
  0xb4   : > { %v436_v61 = vadd.f32 %v2048_v43, %v435_v49 }
  0xb5   : > { %v2074_v20 = vpop.f32.mrf.mxu0 }
  0xb6   : > { %v2072_v9 = vadd.f32 %v572_v34, %v436_v61  ;;  %802 = vmatmul.f32.gmra.mxu3 %v415_v42  ;;  %1016 = vmatmul.f32.gmra.mxu1 %v1993_v52 }
  0xb8   : > { %675 = vmatmul.f32.gmra.mxu2 %v1796_v36  ;;  %919 = vmatmul.f32.gmra.mxu0 %v1993_v52 }
  0xb9   : > { %v576_v22 = vpop.f32.mrf.mxu3 }
  0xbb   : > { %v443_v38 = vpop.f32.mrf.mxu2  ;;  %v2081_v53 = vpop.f32.mrf.mxu1 }
  0xbc   : > { %v444_v62 = vadd.f32 %v2048_v43, %v443_v38 }
  0xbd   : > { %v2086_v12 = vpop.f32.mrf.mxu0 }
  0xbe   : > { %v2084_v1 = vadd.f32 %v576_v22, %v444_v62  ;;  %808 = vmatmul.f32.gmra.mxu3 %v423_v47  ;;  %1020 = vmatmul.f32.gmra.mxu1 %v1784_v27  ;;  %v340_v62 = vadd.f32 %v2048_v43, %v2040_v37 }
  0xc0   : > { %680 = vmatmul.f32.gmra.mxu2 %v1804_v40  ;;  %923 = vmatmul.f32.gmra.mxu0 %v1784_v27 }
  0xc1   : > { %v580_v36 = vpop.f32.mrf.mxu3 }
  0xc3   : > { %v451_v42 = vpop.f32.mrf.mxu2  ;;  %v544_v19 = vpop.f32.mrf.mxu1 }
  0xc4   : > { %v452_v26 = vadd.f32 %v2048_v43, %v451_v42 }
  0xc5   : > { %v379_v52 = vpop.f32.mrf.mxu0 }
  0xc6   : > { %v2094_v35 = vadd.f32 %v580_v36, %v452_v26  ;;  %814 = vmatmul.f32.gmra.mxu3 %v431_v63  ;;  %1024 = vmatmul.f32.gmra.mxu1 %v1791_v33  ;;  %v380_v47 = vadd.f32 %v2048_v43, %v379_v52 }
  0xc8   : > { %685 = vmatmul.f32.gmra.mxu2 %v1835_v57  ;;  %v2101_v40 = vadd.f32 %v544_v19, %v380_v47  ;;  %927 = vmatmul.f32.gmra.mxu0 %v1791_v33  ;;  %v525_v19 = vadd.f32 %v2038_v32, %v340_v62  ;;  %v348_v47 = vadd.f32 %v2048_v43, %v2055_v2 }
  0xc9   : > { %v584_v27 = vpop.f32.mrf.mxu3 }
  0xca   : > { %v529_v32 = vadd.f32 %v2050_v50, %v348_v47 }
  0xcb   : > { %v459_v41 = vpop.f32.mrf.mxu2  ;;  %v548_v46 = vpop.f32.mrf.mxu1 }
  0xcc   : > { %v460_v58 = vadd.f32 %v2048_v43, %v459_v41  ;;  %v2598_v41 = vand.u32 4294901760, %v1961_v30 }
  0xcd   : > { %v387_v5 = vpop.f32.mrf.mxu0 }
  0xce   : > { %v2105_v4 = vadd.f32 %v584_v27, %v460_v58  ;;  %820 = vmatmul.f32.gmra.mxu3 %v439_v13  ;;  %1028 = vmatmul.f32.gmra.mxu1 %v1817_v48  ;;  %v388_v63 = vadd.f32 %v2048_v43, %v387_v5 }
  0xd0   : > { %690 = vmatmul.f32.gmra.mxu2 %v1865_v8  ;;  %v2112_v57 = vadd.f32 %v548_v46, %v388_v63  ;;  %931 = vmatmul.f32.gmra.mxu0 %v1817_v48 }
  0xd1   : > { %v588_v33 = vpop.f32.mrf.mxu3 }
  0xd3   : > { %v467_v11 = vpop.f32.mrf.mxu2  ;;  %v552_v24 = vpop.f32.mrf.mxu1 }
  0xd4   : > { %v468_v39 = vadd.f32 %v2048_v43, %v467_v11 }
  0xd5   : > { %v395_v51 = vpop.f32.mrf.mxu0 }
  0xd6   : > { %v2116_v45 = vadd.f32 %v588_v33, %v468_v39  ;;  %826 = vmatmul.f32.gmra.mxu3 %v447_v28  ;;  %1032 = vmatmul.f32.gmra.mxu1 %v1849_v0  ;;  %v396_v13 = vadd.f32 %v2048_v43, %v395_v51  ;;  %v356_v33 = vadd.f32 %v2048_v43, %v2065_v31 }
  0xd8   : > { %695 = vmatmul.f32.gmra.mxu2 %v1889_v21  ;;  %v2123_v8 = vadd.f32 %v552_v24, %v396_v13  ;;  %935 = vmatmul.f32.gmra.mxu0 %v1849_v0  ;;  %v533_v31 = vadd.f32 %v2060_v16, %v356_v33 }
  0xd9   : > { %v592_v48 = vpop.f32.mrf.mxu3 }
  0xdb   : > { %v475_v3 = vpop.f32.mrf.mxu2  ;;  %v556_v10 = vpop.f32.mrf.mxu1 }
  0xdc   : > { %v476_v17 = vadd.f32 %v2048_v43, %v475_v3 }
  0xdd   : > { %v403_v49 = vpop.f32.mrf.mxu0 }
  0xde   : > { %v2127_v34 = vadd.f32 %v592_v48, %v476_v17  ;;  %832 = vmatmul.f32.gmra.mxu3 %v455_v55  ;;  %1036 = vmatmul.f32.gmra.mxu1 %v1876_v14  ;;  %v404_v28 = vadd.f32 %v2048_v43, %v403_v49 }
  0xe0   : > { %700 = vmatmul.f32.gmra.mxu2 %v1913_v44  ;;  %v2134_v21 = vadd.f32 %v556_v10, %v404_v28  ;;  %939 = vmatmul.f32.gmra.mxu0 %v1876_v14 }
  0xe1   : > { %v596_v0 = vpop.f32.mrf.mxu3 }
  0xe3   : > { %v483_v61 = vpop.f32.mrf.mxu2  ;;  %v560_v22 = vpop.f32.mrf.mxu1 }
  0xe4   : > { %v484_v38 = vadd.f32 %v2048_v43, %v483_v61 }
  0xe5   : > { %v411_v55 = vpop.f32.mrf.mxu0 }
  0xe6   : > { %v2140_v36 = vadd.f32 %v596_v0, %v484_v38  ;;  %838 = vmatmul.f32.gmra.mxu3 %v463_v15  ;;  %1040 = vmatmul.f32.gmra.mxu1 %v1900_v29  ;;  %v412_v44 = vadd.f32 %v2048_v43, %v411_v55  ;;  %v372_v38 = vadd.f32 %v2048_v43, %v2086_v12 }
  0xe8   : > { %705 = vmatmul.f32.gmra.mxu2 %v1937_v6  ;;  %v2147_v14 = vadd.f32 %v560_v22, %v412_v44  ;;  %943 = vmatmul.f32.gmra.mxu0 %v1900_v29 }
  0xe9   : > { %v743_v42 = vpop.f32.mrf.mxu3 }
  0xeb   : > { %v626_v37 = vpop.f32.mrf.mxu2  ;;  %v981_v26 = vpop.f32.mrf.mxu1 }
  0xec   : > { %v627_v52 = vadd.f32 %v626_v37, %v525_v19 }
  0xed   : > { %v884_v27 = vpop.f32.mrf.mxu0 }
  0xee   : > { %v744_v15 = vadd.f32 %v743_v42, %v627_v52  ;;  %844 = vmatmul.f32.gmra.mxu3 %v2598_v41  ;;  %1044 = vmatmul.f32.gmra.mxu1 %v1924_v56 }
  0xf0   : > { %v885_v6 = vadd.f32 %v884_v27, %v744_v15  ;;  %710 = vmatmul.f32.gmra.mxu2 %v1961_v30  ;;  %947 = vmatmul.f32.gmra.mxu0 %v1924_v56 }
  0xf1   : > { %v749_v29 = vpop.f32.mrf.mxu3 }
  0xf2   : > { %v2159_v46 = vadd.f32 %v981_v26, %v885_v6 }
  0xf3   : > { %v631_v58 = vpop.f32.mrf.mxu2  ;;  %v985_v5 = vpop.f32.mrf.mxu1 }
  0xf4   : > { %v1056_v2 = vmax.f32 %v2159_v46, 0.0  ;;  %v632_v63 = vadd.f32 %v631_v58, %v529_v32 }
  0xf5   : > { %v888_v24 = vpop.f32.mrf.mxu0 }
  0xf6   : > { %v750_v11 = vadd.f32 %v749_v29, %v632_v63  ;;  %v1075_v30 = vsel %vm255_vm0, %v1056_v2, 0.0  ;;  %850 = vmatmul.f32.gmra.mxu3 %v479_v25  ;;  %1048 = vmatmul.f32.gmra.mxu1 %v1948_v18  ;;  %v364_v25 = vadd.f32 %v2048_v43, %v2074_v20 }
  0xf7   : > { %1076 = vadd.xlane.f32.xlu0 %v1075_v30 }
  0xf8   : > { %v889_v56 = vadd.f32 %v888_v24, %v750_v11  ;;  %715 = vmatmul.f32.gmra.mxu2 %v1984_v7  ;;  %951 = vmatmul.f32.gmra.mxu0 %v1948_v18  ;;  %v537_v49 = vadd.f32 %v2069_v60, %v364_v25  ;;  %v541_v60 = vadd.f32 %v2081_v53, %v372_v38 }
  0xf9   : > { %v755_v50 = vpop.f32.mrf.mxu3 }
  0xfa   : > { %v2173_v39 = vadd.f32 %v985_v5, %v889_v56 }
  0xfb   : > { %v636_v51 = vpop.f32.mrf.mxu2  ;;  %v989_v13 = vpop.f32.mrf.mxu1 }
  0xfc   : > { %v1057_v48 = vmax.f32 %v2173_v39, 0.0  ;;  %v637_v3 = vadd.f32 %v636_v51, %v533_v31 }
  0xfd   : > { %v892_v17 = vpop.f32.mrf.mxu0 }
  0xfe   : > { %v756_v10 = vadd.f32 %v755_v50, %v637_v3  ;;  %v1078_v7 = vsel %vm255_vm0, %v1057_v48, 0.0  ;;  %1052 = vmatmul.f32.gmra.mxu1 %v1972_v54 }
  0xff   : > { %1079 = vadd.xlane.f32.xlu0 %v1078_v7 }
 0x100   : > { %v893_v18 = vadd.f32 %v892_v17, %v756_v10  ;;  %955 = vmatmul.f32.gmra.mxu0 %v1972_v54 }
 0x101   : > { %v761_v16 = vpop.f32.mrf.mxu3 }
 0x102   : > { %v2184_v28 = vadd.f32 %v989_v13, %v893_v18 }
 0x103   : > { %v641_v0 = vpop.f32.mrf.mxu2  ;;  %v993_v61 = vpop.f32.mrf.mxu1 }
 0x104   : > { %v1058_v20 = vmax.f32 %v2184_v28, 0.0  ;;  %v642_v22 = vadd.f32 %v641_v0, %v537_v49 }
 0x105   : > { %v896_v55 = vpop.f32.mrf.mxu0 }
 0x106   : > { %v762_v62 = vadd.f32 %v761_v16, %v642_v22  ;;  %v1081_v44 = vsel %vm255_vm0, %v1058_v20, 0.0 }
 0x107   : > { %1082 = vadd.xlane.f32.xlu1 %v1081_v44 }
 0x108   : > { %v897_v54 = vadd.f32 %v896_v55, %v762_v62 }
 0x109   : > { %v767_v42 = vpop.f32.mrf.mxu3 }
 0x10a   : > { %v2193_v19 = vadd.f32 %v993_v61, %v897_v54 }
 0x10b   : > { %v646_v37 = vpop.f32.mrf.mxu2  ;;  %v997_v26 = vpop.f32.mrf.mxu1 }
 0x10c   : > { %v1059_v52 = vmax.f32 %v2193_v19, 0.0  ;;  %v647_v47 = vadd.f32 %v646_v37, %v541_v60 }
 0x10d   : > { %v900_v43 = vpop.f32.mrf.mxu0 }
 0x10e   : > { %v768_v15 = vadd.f32 %v767_v42, %v647_v47  ;;  %v1084_v12 = vsel %vm255_vm0, %v1059_v52, 0.0 }
 0x10f   : > { %1085 = vadd.xlane.f32.xlu1 %v1084_v12 }
 0x110   : > { %v901_v27 = vadd.f32 %v900_v43, %v768_v15 }
 0x111   : > { %v773_v41 = vpop.f32.mrf.mxu3 }
 0x112   : > { %v2199_v6 = vadd.f32 %v997_v26, %v901_v27 }
 0x113   : > { %v651_v29 = vpop.f32.mrf.mxu2  ;;  %v1001_v53 = vpop.f32.mrf.mxu1 }
 0x114   : > { %v1060_v32 = vmax.f32 %v2199_v6, 0.0  ;;  %v652_v58 = vadd.f32 %v651_v29, %v2101_v40 }
 0x115   : > { %v904_v63 = vpop.f32.mrf.mxu0 }
 0x116   : > { %v774_v5 = vadd.f32 %v773_v41, %v652_v58  ;;  %v1087_v33 = vsel %vm255_vm0, %v1060_v32, 0.0 }
 0x117   : > { %1088 = vadd.xlane.f32.xlu2 %v1087_v33 }
 0x118   : > { %v905_v11 = vadd.f32 %v904_v63, %v774_v5 }
 0x119   : > { %v779_v24 = vpop.f32.mrf.mxu3 }
 0x11a   : > { %v2206_v30 = vadd.f32 %v1001_v53, %v905_v11 }
 0x11b   : > { %v656_v56 = vpop.f32.mrf.mxu2  ;;  %v1005_v50 = vpop.f32.mrf.mxu1 }
 0x11c   : > { %v1061_v31 = vmax.f32 %v2206_v30, 0.0  ;;  %v657_v51 = vadd.f32 %v656_v56, %v2112_v57 }
 0x11d   : > { %v908_v3 = vpop.f32.mrf.mxu0 }
 0x11e   : > { %v780_v13 = vadd.f32 %v779_v24, %v657_v51  ;;  %v1090_v40 = vsel %vm255_vm0, %v1061_v31, 0.0 }
 0x11f   : > { %1091 = vadd.xlane.f32.xlu2 %v1090_v40 }
 0x120   : > { %v909_v25 = vadd.f32 %v908_v3, %v780_v13 }
 0x121   : > { %v785_v10 = vpop.f32.mrf.mxu3 }
 0x122   : > { %v2213_v17 = vadd.f32 %v1005_v50, %v909_v25 }
 0x123   : > { %v661_v7 = vpop.f32.mrf.mxu2  ;;  %v1009_v18 = vpop.f32.mrf.mxu1 }
 0x124   : > { %v1062_v16 = vmax.f32 %v2213_v17, 0.0  ;;  %v662_v49 = vadd.f32 %v661_v7, %v2123_v8 }
 0x125   : > { %v912_v61 = vpop.f32.mrf.mxu0 }
 0x126   : > { %v786_v0 = vadd.f32 %v785_v10, %v662_v49  ;;  %v1093_v57 = vsel %vm255_vm0, %v1062_v16, 0.0 }
 0x127   : > { %1094 = vadd.xlane.f32.xlu0 %v1093_v57 }
 0x128   : > { %v913_v22 = vadd.f32 %v912_v61, %v786_v0 }
 0x129   : > { %v791_v38 = vpop.f32.mrf.mxu3 }
 0x12a   : > { %v2220_v62 = vadd.f32 %v1009_v18, %v913_v22 }
 0x12b   : > { %v666_v55 = vpop.f32.mrf.mxu2  ;;  %v1013_v44 = vpop.f32.mrf.mxu1 }
 0x12c   : > { %v1063_v54 = vmax.f32 %v2220_v62, 0.0  ;;  %v667_v42 = vadd.f32 %v666_v55, %v2134_v21 }
 0x12d   : > { %v916_v37 = vpop.f32.mrf.mxu0 }
 0x12e   : > { %v792_v60 = vadd.f32 %v791_v38, %v667_v42  ;;  %v1096_v8 = vsel %vm255_vm0, %v1063_v54, 0.0 }
 0x12f   : > { %1097 = vadd.xlane.f32.xlu1 %v1096_v8  ;;  %v1698_v8 = vmov 32.0  }
 0x130   : > { %v917_v26 = vadd.f32 %v916_v37, %v792_v60  ;;  %1650 = vrcp.f32 %v1698_v8 }
 0x131   : > { %v797_v47 = vpop.f32.mrf.mxu3 }
 0x132   : > { %v2227_v15 = vadd.f32 %v1013_v44, %v917_v26 }
 0x133   : > { %v671_v43 = vpop.f32.mrf.mxu2  ;;  %v1017_v12 = vpop.f32.mrf.mxu1 }
 0x134   : > { %v1064_v27 = vmax.f32 %v2227_v15, 0.0  ;;  %v672_v41 = vadd.f32 %v671_v43, %v2147_v14 }
 0x135   : > { %v920_v53 = vpop.f32.mrf.mxu0 }
 0x136   : > { %v798_v29 = vadd.f32 %v797_v47, %v672_v41  ;;  %v1099_v21 = vsel %vm255_vm0, %v1064_v27, 0.0 }
 0x137   : > { %1100 = vadd.xlane.f32.xlu2 %v1099_v21 }
 0x138   : > { %v921_v58 = vadd.f32 %v920_v53, %v798_v29 }
 0x139   : > { %v803_v5 = vpop.f32.mrf.mxu3 }
 0x13a   : > { %v2234_v63 = vadd.f32 %v1017_v12, %v921_v58 }
 0x13b   : > { %v676_v33 = vpop.f32.mrf.mxu2  ;;  %v1021_v11 = vpop.f32.mrf.mxu1 }
 0x13c   : > { %v1065_v24 = vmax.f32 %v2234_v63, 0.0  ;;  %v677_v56 = vadd.f32 %v676_v33, %v2053_v59 }
 0x13d   : > { %v924_v51 = vpop.f32.mrf.mxu0 }
 0x13e   : > { %v804_v50 = vadd.f32 %v803_v5, %v677_v56  ;;  %v1102_v14 = vsel %vm255_vm0, %v1065_v24, 0.0 }
 0x13f   : > { %1103 = vadd.xlane.f32.xlu0 %v1102_v14 }
 0x140   : > { %v925_v13 = vadd.f32 %v924_v51, %v804_v50 }
 0x141   : > { %v809_v3 = vpop.f32.mrf.mxu3 }
 0x142   : > { %v2241_v40 = vadd.f32 %v1021_v11, %v925_v13 }
 0x143   : > { %v681_v25 = vpop.f32.mrf.mxu2  ;;  %v1025_v10 = vpop.f32.mrf.mxu1 }
 0x144   : > { %v1066_v7 = vmax.f32 %v2241_v40, 0.0  ;;  %v682_v18 = vadd.f32 %v681_v25, %v2063_v23 }
 0x145   : > { %v928_v0 = vpop.f32.mrf.mxu0 }
 0x146   : > { %v810_v49 = vadd.f32 %v809_v3, %v682_v18  ;;  %v1105_v59 = vsel %vm255_vm0, %v1066_v7, 0.0 }
 0x147   : > { %1106 = vadd.xlane.f32.xlu1 %v1105_v59 }
 0x148   : > { %v929_v61 = vadd.f32 %v928_v0, %v810_v49 }
 0x149   : > { %v815_v57 = vpop.f32.mrf.mxu3 }
 0x14a   : > { %v2248_v22 = vadd.f32 %v1025_v10, %v929_v61 }
 0x14b   : > { %v686_v38 = vpop.f32.mrf.mxu2  ;;  %v1029_v55 = vpop.f32.mrf.mxu1 }
 0x14c   : > { %v1067_v44 = vmax.f32 %v2248_v22, 0.0  ;;  %v687_v42 = vadd.f32 %v686_v38, %v2072_v9  ;;  %v1651_v9 = vpop.eup %1650 }
 0x14d   : > { %v932_v37 = vpop.f32.mrf.mxu0  ;;  %v1133_v11 = vmul.f32 32.0, %v1651_v9  ;;  %vm1137_vm1 = vweird.f32 %v1651_v9 }
 0x14e   : > { %v816_v60 = vadd.f32 %v815_v57, %v687_v42  ;;  %v1108_v23 = vsel %vm255_vm0, %v1067_v44, 0.0 }
 0x14f   : > { %1109 = vadd.xlane.f32.xlu2 %v1108_v23 }
 0x150   : > { %v933_v26 = vadd.f32 %v932_v37, %v816_v60 }
 0x151   : > { %v821_v47 = vpop.f32.mrf.mxu3 }
 0x152   : > { %v2255_v43 = vadd.f32 %v1029_v55, %v933_v26 }
 0x153   : > { %v691_v12 = vpop.f32.mrf.mxu2  ;;  %v1033_v41 = vpop.f32.mrf.mxu1 }
 0x154   : > { %v1068_v29 = vmax.f32 %v2255_v43, 0.0  ;;  %v692_v53 = vadd.f32 %v691_v12, %v2084_v1  ;;  %v1134_v1 = vsub.f32 1.0, %v1133_v11 }
 0x155   : > { %v936_v58 = vpop.f32.mrf.mxu0 }
 0x156   : > { %v822_v21 = vadd.f32 %v821_v47, %v692_v53  ;;  %v1111_v5 = vsel %vm255_vm0, %v1068_v29, 0.0  ;;  %v1135_v0 = vmul.f32 %v1651_v9, %v1134_v1 }
 0x157   : > { %1112 = vadd.xlane.f32.xlu0 %v1111_v5 }
 0x158   : > { %v937_v33 = vadd.f32 %v936_v58, %v822_v21 }
 0x159   : > { %v827_v56 = vpop.f32.mrf.mxu3 }
 0x15a   : > { %v2262_v50 = vadd.f32 %v1033_v41, %v937_v33 }
 0x15b   : > { %v696_v51 = vpop.f32.mrf.mxu2  ;;  %v1037_v14 = vpop.f32.mrf.mxu1 }
 0x15c   : > { %v1069_v13 = vmax.f32 %v2262_v50, 0.0  ;;  %v697_v3 = vadd.f32 %v696_v51, %v2094_v35  ;;  %v1136_v35 = vadd.f32 %v1651_v9, %v1135_v0 }
 0x15d   : > { %v940_v10 = vpop.f32.mrf.mxu0 }
 0x15e   : > { %v828_v25 = vadd.f32 %v827_v56, %v697_v3  ;;  %v1114_v18 = vsel %vm255_vm0, %v1069_v13, 0.0  ;;  %v2276_v26 = vsel %vm1137_vm1, %v1651_v9, %v1136_v35 }
 0x15f   : > { %1115 = vadd.xlane.f32.xlu1 %v1114_v18 }
 0x160   : > { %v941_v49 = vadd.f32 %v940_v10, %v828_v25 }
 0x161   : > { %v833_v59 = vpop.f32.mrf.mxu3 }
 0x162   : > { %v2269_v61 = vadd.f32 %v1037_v14, %v941_v49 }
 0x163   : > { %v701_v57 = vpop.f32.mrf.mxu2  ;;  %v1041_v38 = vpop.f32.mrf.mxu1 }
 0x164   : > { %v1070_v55 = vmax.f32 %v2269_v61, 0.0  ;;  %v702_v42 = vadd.f32 %v701_v57, %v2105_v4 }
 0x165   : > { %v944_v37 = vpop.f32.mrf.mxu0 }
 0x166   : > { %v834_v60 = vadd.f32 %v833_v59, %v702_v42  ;;  %v1117_v23 = vsel %vm255_vm0, %v1070_v55, 0.0 }
 0x167   : > { %1118 = vadd.xlane.f32.xlu2 %v1117_v23 }
 0x168   : > { %v945_v8 = vadd.f32 %v944_v37, %v834_v60 }
 0x169   : > { %v839_v47 = vpop.f32.mrf.mxu3 }
 0x16a   : > { %v2278_v12 = vadd.f32 %v1041_v38, %v945_v8  ;;  %v1077_v41 = vpop.xlane.xlu0 %1076 }
 0x16b   : > { %v1139_v53 = vmul.f32 %v2276_v26, %v1077_v41  ;;  %v706_v21 = vpop.f32.mrf.mxu2  ;;  %v1045_v4 = vpop.f32.mrf.mxu1 }
 0x16c   : > { %v1071_v58 = vmax.f32 %v2278_v12, 0.0  ;;  %v707_v5 = vadd.f32 %v706_v21, %v2116_v45 }
 0x16d   : > { %v2285_v33 = vsub.f32 %v1056_v2, %v1139_v53  ;;  %v948_v56 = vpop.f32.mrf.mxu0 }
 0x16e   : > { %v840_v11 = vadd.f32 %v839_v47, %v707_v5  ;;  %v1120_v9 = vsel %vm255_vm0, %v1071_v58, 0.0 }
 0x16f   : > { %1121 = vadd.xlane.f32.xlu0 %v1120_v9  ;;  %v1177_v51 = vmul.f32 %v2285_v33, %v2285_v33 }
 0x170   : > { %v949_v14 = vadd.f32 %v948_v56, %v840_v11 }
 0x171   : > { %v1196_v3 = vsel %vm255_vm0, %v1177_v51, 0.0  ;;  %v845_v1 = vpop.f32.mrf.mxu3 }
 0x172   : > { %v2293_v25 = vadd.f32 %v1045_v4, %v949_v14  ;;  %1197 = vadd.xlane.f32.xlu1 %v1196_v3  ;;  %v1080_v0 = vpop.xlane.xlu0 %1079 }
 0x173   : > { %v711_v45 = vpop.f32.mrf.mxu2  ;;  %v1049_v10 = vpop.f32.mrf.mxu1  ;;  %v1140_v38 = vmul.f32 %v2276_v26, %v1080_v0 }
 0x174   : > { %v712_v46 = vadd.f32 %v711_v45, %v2127_v34  ;;  %v1072_v2 = vmax.f32 %v2293_v25, 0.0 }
 0x175   : > { %v952_v49 = vpop.f32.mrf.mxu0  ;;  %v2307_v8 = vsub.f32 %v1057_v48, %v1140_v38 }
 0x176   : > { %v846_v18 = vadd.f32 %v845_v1, %v712_v46  ;;  %v1123_v57 = vsel %vm255_vm0, %v1072_v2, 0.0 }
 0x178   : > { %v953_v59 = vadd.f32 %v952_v49, %v846_v18 }
 0x179   : > { %v851_v37 = vpop.f32.mrf.mxu3 }
 0x17a   : > { %v2301_v42 = vadd.f32 %v1049_v10, %v953_v59  ;;  %v1083_v35 = vpop.xlane.xlu1 %1082  ;;  %1124 = vadd.xlane.f32.xlu1 %v1123_v57 }
 0x17b   : > { %v716_v60 = vpop.f32.mrf.mxu2  ;;  %v1053_v21 = vpop.f32.mrf.mxu1  ;;  %v1141_v5 = vmul.f32 %v2276_v26, %v1083_v35 }
 0x17c   : > { %v1073_v34 = vmax.f32 %v2301_v42, 0.0  ;;  %v717_v23 = vadd.f32 %v716_v60, %v2140_v36  ;;  %v1178_v36 = vmul.f32 %v2307_v8, %v2307_v8 }
 0x17d   : > { %v956_v41 = vpop.f32.mrf.mxu0  ;;  %v2325_v51 = vsub.f32 %v1058_v20, %v1141_v5 }
 0x17e   : > { %v852_v47 = vadd.f32 %v851_v37, %v717_v23  ;;  %v1126_v53 = vsel %vm255_vm0, %v1073_v34, 0.0  ;;  %v1199_v3 = vsel %vm255_vm0, %v1178_v36, 0.0 }
 0x17f   : > { %1127 = vadd.xlane.f32.xlu2 %v1126_v53  ;;  %v1179_v28 = vmul.f32 %v2325_v51, %v2325_v51 }
 0x180   : > { %v957_v4 = vadd.f32 %v956_v41, %v852_v47 }
 0x181   : > { %v1202_v46 = vsel %vm255_vm0, %v1179_v28, 0.0 }
 0x182   : > { %v2313_v11 = vadd.f32 %v1053_v21, %v957_v4  ;;  %v1086_v56 = vpop.xlane.xlu1 %1085 }
 0x183   : > { %v1142_v39 = vmul.f32 %v2276_v26, %v1086_v56 }
 0x184   : > { %v1074_v48 = vmax.f32 %v2313_v11, 0.0 }
 0x185   : > { %v2321_v9 = vsub.f32 %v1059_v52, %v1142_v39 }
 0x186   : > { %v1129_v14 = vsel %vm255_vm0, %v1074_v48, 0.0 }
 0x187   : > { %1130 = vadd.xlane.f32.xlu0 %v1129_v14  ;;  %1200 = vadd.xlane.f32.xlu2 %v1199_v3  ;;  %v1180_v1 = vmul.f32 %v2321_v9, %v2321_v9 }
 0x189   : > { %v1205_v45 = vsel %vm255_vm0, %v1180_v1, 0.0 }
 0x18a   : > { %v1089_v19 = vpop.xlane.xlu2 %1088  ;;  %1206 = vadd.xlane.f32.xlu1 %v1205_v45 }
 0x18b   : > { %v1143_v20 = vmul.f32 %v2276_v26, %v1089_v19 }
 0x18d   : > { %v2339_v52 = vsub.f32 %v1060_v32, %v1143_v20 }
 0x18f   : > { %1203 = vadd.xlane.f32.xlu0 %v1202_v46  ;;  %v1181_v10 = vmul.f32 %v2339_v52, %v2339_v52 }
 0x191   : > { %v1208_v18 = vsel %vm255_vm0, %v1181_v10, 0.0 }
 0x192   : > { %v1092_v49 = vpop.xlane.xlu2 %1091  ;;  %1209 = vadd.xlane.f32.xlu2 %v1208_v18 }
 0x193   : > { %v1144_v0 = vmul.f32 %v2276_v26, %v1092_v49 }
 0x195   : > { %v2348_v59 = vsub.f32 %v1061_v31, %v1144_v0 }
 0x197   : > { %v1182_v6 = vmul.f32 %v2348_v59, %v2348_v59 }
 0x199   : > { %v1211_v32 = vsel %vm255_vm0, %v1182_v6, 0.0 }
 0x19a   : > { %1212 = vadd.xlane.f32.xlu0 %v1211_v32  ;;  %v1095_v57 = vpop.xlane.xlu0 %1094 }
 0x19b   : > { %v1145_v38 = vmul.f32 %v2276_v26, %v1095_v57 }
 0x19d   : > { %v2356_v35 = vsub.f32 %v1062_v16, %v1145_v38 }
 0x19f   : > { %v1183_v60 = vmul.f32 %v2356_v35, %v2356_v35 }
 0x1a1   : > { %v1214_v30 = vsel %vm255_vm0, %v1183_v60, 0.0 }
 0x1a2   : > { %v1098_v31 = vpop.xlane.xlu1 %1097  ;;  %1215 = vadd.xlane.f32.xlu1 %v1214_v30 }
 0x1a3   : > { %v1146_v37 = vmul.f32 %v2276_v26, %v1098_v31 }
 0x1a5   : > { %v2364_v23 = vsub.f32 %v1063_v54, %v1146_v37 }
 0x1a7   : > { %v1184_v47 = vmul.f32 %v2364_v23, %v2364_v23 }
 0x1a9   : > { %v1217_v17 = vsel %vm255_vm0, %v1184_v47, 0.0 }
 0x1aa   : > { %v1101_v16 = vpop.xlane.xlu2 %1100  ;;  %1218 = vadd.xlane.f32.xlu2 %v1217_v17 }
 0x1ab   : > { %v1147_v41 = vmul.f32 %v2276_v26, %v1101_v16 }
 0x1ad   : > { %v2372_v53 = vsub.f32 %v1064_v27, %v1147_v41 }
 0x1af   : > { %v1185_v21 = vmul.f32 %v2372_v53, %v2372_v53 }
 0x1b1   : > { %v1220_v62 = vsel %vm255_vm0, %v1185_v21, 0.0 }
 0x1b2   : > { %1221 = vadd.xlane.f32.xlu0 %v1220_v62  ;;  %v1104_v54 = vpop.xlane.xlu0 %1103 }
 0x1b3   : > { %v1148_v4 = vmul.f32 %v2276_v26, %v1104_v54 }
 0x1b5   : > { %v2380_v5 = vsub.f32 %v1065_v24, %v1148_v4 }
 0x1b7   : > { %v1186_v56 = vmul.f32 %v2380_v5, %v2380_v5 }
 0x1b9   : > { %v1223_v15 = vsel %vm255_vm0, %v1186_v56, 0.0 }
 0x1ba   : > { %v1107_v27 = vpop.xlane.xlu1 %1106  ;;  %1224 = vadd.xlane.f32.xlu1 %v1223_v15 }
 0x1bb   : > { %v1149_v36 = vmul.f32 %v2276_v26, %v1107_v27  ;;  %v2453_v27 = vld [vmem:[%s2594_s3] ss:$0 sm:$0xff] }
 0x1bd   : > { %v2388_v39 = vsub.f32 %v1066_v7, %v1149_v36 }
 0x1bf   : > { %v1187_v14 = vmul.f32 %v2388_v39, %v2388_v39 }
 0x1c1   : > { %v1226_v63 = vsel %vm255_vm0, %v1187_v14, 0.0 }
 0x1c2   : > { %v1110_v24 = vpop.xlane.xlu2 %1109  ;;  %1227 = vadd.xlane.f32.xlu2 %v1226_v63 }
 0x1c3   : > { %v1150_v3 = vmul.f32 %v2276_v26, %v1110_v24  ;;  %v2460_v24 = vld [vmem:[%s2595_s4] ss:$0 sm:$0xff] }
 0x1c5   : > { %v2396_v1 = vsub.f32 %v1067_v44, %v1150_v3 }
 0x1c7   : > { %v1188_v45 = vmul.f32 %v2396_v1, %v2396_v1 }
 0x1c9   : > { %v1229_v40 = vsel %vm255_vm0, %v1188_v45, 0.0 }
 0x1ca   : > { %1230 = vadd.xlane.f32.xlu0 %v1229_v40  ;;  %v1113_v7 = vpop.xlane.xlu0 %1112 }
 0x1cb   : > { %v1151_v19 = vmul.f32 %v2276_v26, %v1113_v7 }
 0x1cd   : > { %v2404_v28 = vsub.f32 %v1068_v29, %v1151_v19 }
 0x1cf   : > { %v1189_v20 = vmul.f32 %v2404_v28, %v2404_v28 }
 0x1d1   : > { %v1232_v22 = vsel %vm255_vm0, %v1189_v20, 0.0 }
 0x1d2   : > { %v1116_v44 = vpop.xlane.xlu1 %1115  ;;  %1233 = vadd.xlane.f32.xlu1 %v1232_v22 }
 0x1d3   : > { %v1152_v46 = vmul.f32 %v2276_v26, %v1116_v44 }
 0x1d5   : > { %v2412_v10 = vsub.f32 %v1069_v13, %v1152_v46 }
 0x1d7   : > { %v1190_v18 = vmul.f32 %v2412_v10, %v2412_v10 }
 0x1d9   : > { %v1235_v43 = vsel %vm255_vm0, %v1190_v18, 0.0 }
 0x1da   : > { %v1119_v29 = vpop.xlane.xlu2 %1118  ;;  %1236 = vadd.xlane.f32.xlu2 %v1235_v43 }
 0x1db   : > { %v1153_v49 = vmul.f32 %v2276_v26, %v1119_v29 }
 0x1dd   : > { %v2420_v0 = vsub.f32 %v1070_v55, %v1153_v49 }
 0x1df   : > { %v1191_v6 = vmul.f32 %v2420_v0, %v2420_v0 }
 0x1e1   : > { %v1238_v50 = vsel %vm255_vm0, %v1191_v6, 0.0 }
 0x1e2   : > { %1239 = vadd.xlane.f32.xlu0 %v1238_v50  ;;  %v1122_v13 = vpop.xlane.xlu0 %1121 }
 0x1e3   : > { %v1154_v32 = vmul.f32 %v2276_v26, %v1122_v13 }
 0x1e5   : > { %v2428_v57 = vsub.f32 %v1071_v58, %v1154_v32  ;;  %v1198_v38 = vpop.xlane.xlu1 %1197 }
 0x1e6   : > { %v1253_v60 = vmul.f32 %v1198_v38, %v2276_v26 }
 0x1e7   : > { %v1192_v61 = vmul.f32 %v2428_v57, %v2428_v57 }
 0x1e8   : > { %v1272_v55 = vadd.f32 1e-05, %v1253_v60 }
 0x1e9   : > { %v1241_v30 = vsel %vm255_vm0, %v1192_v61, 0.0 }
 0x1ea   : > { %1652 = vrsqrt.f32 %v1272_v55  ;;  %1242 = vadd.xlane.f32.xlu1 %v1241_v30  ;;  %vm1297_vm3 = vweird.f32 %v1272_v55 }
 0x1ed   : > { %v1125_v31 = vpop.xlane.xlu1 %1124 }
 0x1ee   : > { %v1155_v37 = vmul.f32 %v2276_v26, %v1125_v31 }
 0x1f0   : > { %v1653_v47 = vpop.eup %1652  ;;  %v2437_v12 = vsub.f32 %v1072_v2, %v1155_v37 }
 0x1f1   : > { %v1292_v58 = vmul.f32 %v1653_v47, %v1272_v55  ;;  %vm1298_vm2 = vweird.f32 %v1653_v47 }
 0x1f2   : > { %v1128_v17 = vpop.xlane.xlu2 %1127  ;;  %v1193_v16 = vmul.f32 %v2437_v12, %v2437_v12  ;;  %vm1299_vm4 = vmor %vm1297_vm3, %vm1298_vm2 }
 0x1f3   : > { %v1293_v41 = vmul.f32 %v1653_v47, %v1292_v58  ;;  %v1156_v21 = vmul.f32 %v2276_v26, %v1128_v17 }
 0x1f4   : > { %v1244_v62 = vsel %vm255_vm0, %v1193_v16, 0.0 }
 0x1f5   : > { %v1294_v54 = vmul.f32 0.5, %v1293_v41  ;;  %v2445_v4 = vsub.f32 %v1073_v34, %v1156_v21  ;;  %1245 = vadd.xlane.f32.xlu2 %v1244_v62 }
 0x1f7   : > { %v1295_v56 = vsub.f32 1.5, %v1294_v54  ;;  %v1194_v25 = vmul.f32 %v2445_v4, %v2445_v4 }
 0x1f9   : > { %v1296_v2 = vmul.f32 %v1653_v47, %v1295_v56  ;;  %v1247_v15 = vsel %vm255_vm0, %v1194_v25, 0.0 }
 0x1fa   : > { %1248 = vadd.xlane.f32.xlu0 %v1247_v15  ;;  %v1201_v42 = vpop.xlane.xlu2 %1200  ;;  %v1131_v34 = vpop.xlane.xlu0 %1130 }
 0x1fb   : > { %v1300_v36 = vsel %vm1299_vm4, %v1653_v47, %v1296_v2  ;;  %v1254_v14 = vmul.f32 %v1201_v42, %v2276_v26  ;;  %v1157_v63 = vmul.f32 %v2276_v26, %v1131_v34 }
 0x1fc   : > { %v1481_v3 = vmul.f32 %v1300_v36, %v2285_v33 }
 0x1fd   : > { %v1273_v45 = vadd.f32 1e-05, %v1254_v14  ;;  %v2465_v40 = vsub.f32 %v1074_v48, %v1157_v63  ;;  %v1207_v7 = vpop.xlane.xlu1 %1206 }
 0x1fe   : > { %v1504_v19 = vmul.f32 %v2453_v27, %v1481_v3  ;;  %v1256_v20 = vmul.f32 %v1207_v7, %v2276_v26 }
 0x1ff   : > { %1654 = vrsqrt.f32 %v1273_v45  ;;  %v1195_v33 = vmul.f32 %v2465_v40, %v2465_v40  ;;  %vm1307_vm6 = vweird.f32 %v1273_v45 }
 0x200   : > { %v1527_v11 = vadd.f32 %v2460_v24, %v1504_v19  ;;  %v1275_v48 = vadd.f32 1e-05, %v1256_v20 }
 0x201   : > { %v1250_v22 = vsel %vm255_vm0, %v1195_v33, 0.0 }
 0x202   : > { %1546 = vst.msk [vmem:[%s2474_s16] sm:$0xff] %vm255_vm0, %v1527_v11  ;;  %1656 = vrsqrt.f32 %v1275_v48  ;;  %1251 = vadd.xlane.f32.xlu1 %v1250_v22  ;;  %v1204_v44 = vpop.xlane.xlu0 %1203  ;;  %vm1327_vm9 = vweird.f32 %v1275_v48 }
 0x203   : > { %v1255_v46 = vmul.f32 %v1204_v44, %v2276_v26 }
 0x205   : > { %v1655_v18 = vpop.eup %1654  ;;  %v1274_v43 = vadd.f32 1e-05, %v1255_v46  ;;  %v1210_v29 = vpop.xlane.xlu2 %1209 }
 0x206   : > { %v1302_v49 = vmul.f32 %v1655_v18, %v1273_v45  ;;  %v1257_v6 = vmul.f32 %v1210_v29, %v2276_v26  ;;  %vm1308_vm5 = vweird.f32 %v1655_v18 }
 0x207   : > { %1658 = vrsqrt.f32 %v1274_v43  ;;  %vm1309_vm7 = vmor %vm1307_vm6, %vm1308_vm5  ;;  %vm1317_vm12 = vweird.f32 %v1274_v43 }
 0x208   : > { %v1657_v50 = vpop.eup %1656  ;;  %v1303_v13 = vmul.f32 %v1655_v18, %v1302_v49  ;;  %v1276_v32 = vadd.f32 1e-05, %v1257_v6 }
 0x209   : > { %v1322_v38 = vmul.f32 %v1657_v50, %v1275_v48  ;;  %vm1328_vm8 = vweird.f32 %v1657_v50 }
 0x20a   : > { %v1304_v60 = vmul.f32 0.5, %v1303_v13  ;;  %1660 = vrsqrt.f32 %v1276_v32  ;;  %vm1329_vm10 = vmor %vm1327_vm9, %vm1328_vm8  ;;  %vm1337_vm15 = vweird.f32 %v1276_v32 }
 0x20b   : > { %v1323_v61 = vmul.f32 %v1657_v50, %v1322_v38 }
 0x20c   : > { %v1305_v55 = vsub.f32 1.5, %v1304_v60 }
 0x20d   : > { %v1659_v30 = vpop.eup %1658  ;;  %v1324_v31 = vmul.f32 0.5, %v1323_v61  ;;  %v1213_v37 = vpop.xlane.xlu0 %1212 }
 0x20e   : > { %v1306_v47 = vmul.f32 %v1655_v18, %v1305_v55  ;;  %v1312_v58 = vmul.f32 %v1659_v30, %v1274_v43  ;;  %v1258_v17 = vmul.f32 %v1213_v37, %v2276_v26  ;;  %vm1318_vm11 = vweird.f32 %v1659_v30 }
 0x20f   : > { %v1325_v16 = vsub.f32 1.5, %v1324_v31  ;;  %vm1319_vm13 = vmor %vm1317_vm12, %vm1318_vm11 }
 0x210   : > { %v1661_v41 = vpop.eup %1660  ;;  %v1310_v21 = vsel %vm1309_vm7, %v1655_v18, %v1306_v47  ;;  %v1313_v62 = vmul.f32 %v1659_v30, %v1312_v58  ;;  %v1277_v54 = vadd.f32 1e-05, %v1258_v17 }
 0x211   : > { %v1482_v56 = vmul.f32 %v1310_v21, %v2307_v8  ;;  %v1326_v25 = vmul.f32 %v1657_v50, %v1325_v16  ;;  %v1332_v2 = vmul.f32 %v1661_v41, %v1276_v32  ;;  %vm1338_vm14 = vweird.f32 %v1661_v41 }
 0x212   : > { %v1314_v15 = vmul.f32 0.5, %v1313_v62  ;;  %1662 = vrsqrt.f32 %v1277_v54  ;;  %vm1339_vm1 = vmor %vm1337_vm15, %vm1338_vm14  ;;  %vm1347_vm3 = vweird.f32 %v1277_v54 }
 0x213   : > { %v1505_v42 = vmul.f32 %v2453_v27, %v1482_v56  ;;  %v1330_v34 = vsel %vm1329_vm10, %v1657_v50, %v1326_v25  ;;  %v1333_v36 = vmul.f32 %v1661_v41, %v1332_v2 }
 0x214   : > { %v1484_v14 = vmul.f32 %v1330_v34, %v2321_v9  ;;  %v1315_v63 = vsub.f32 1.5, %v1314_v15 }
 0x215   : > { %v1528_v3 = vadd.f32 %v2460_v24, %v1505_v42  ;;  %v1334_v45 = vmul.f32 0.5, %v1333_v36  ;;  %v1216_v7 = vpop.xlane.xlu1 %1215 }
 0x216   : > { %v1507_v8 = vmul.f32 %v2453_v27, %v1484_v14  ;;  %v1316_v19 = vmul.f32 %v1659_v30, %v1315_v63  ;;  %v1259_v20 = vmul.f32 %v1216_v7, %v2276_v26 }
 0x217   : > { %1547 = vst.msk [vmem:[%s2474_s16 + $0x8] sm:$0xff] %vm255_vm0, %v1528_v3  ;;  %v1335_v33 = vsub.f32 1.5, %v1334_v45 }
 0x218   : > { %v1663_v11 = vpop.eup %1662  ;;  %v1530_v9 = vadd.f32 %v2460_v24, %v1507_v8  ;;  %v1320_v48 = vsel %vm1319_vm13, %v1659_v30, %v1316_v19  ;;  %v1278_v22 = vadd.f32 1e-05, %v1259_v20 }
 0x219   : > { %v1483_v44 = vmul.f32 %v1320_v48, %v2325_v51  ;;  %v1336_v46 = vmul.f32 %v1661_v41, %v1335_v33  ;;  %v1342_v18 = vmul.f32 %v1663_v11, %v1277_v54  ;;  %vm1348_vm2 = vweird.f32 %v1663_v11 }
 0x21a   : > { %1549 = vst.msk [vmem:[%s2474_s16 + $0x18] sm:$0xff] %vm255_vm0, %v1530_v9  ;;  %1664 = vrsqrt.f32 %v1278_v22  ;;  %vm1349_vm4 = vmor %vm1347_vm3, %vm1348_vm2  ;;  %vm1357_vm6 = vweird.f32 %v1278_v22 }
 0x21b   : > { %v1506_v43 = vmul.f32 %v2453_v27, %v1483_v44  ;;  %v1340_v29 = vsel %vm1339_vm1, %v1661_v41, %v1336_v46  ;;  %v1343_v49 = vmul.f32 %v1663_v11, %v1342_v18 }
 0x21c   : > { %v1485_v6 = vmul.f32 %v1340_v29, %v2339_v52 }
 0x21d   : > { %v1529_v50 = vadd.f32 %v2460_v24, %v1506_v43  ;;  %v1344_v13 = vmul.f32 0.5, %v1343_v49  ;;  %v1219_v38 = vpop.xlane.xlu2 %1218 }
 0x21e   : > { %v1508_v51 = vmul.f32 %v2453_v27, %v1485_v6  ;;  %v1260_v32 = vmul.f32 %v1219_v38, %v2276_v26 }
 0x21f   : > { %1548 = vst.msk [vmem:[%s2474_s16 + $0x10] sm:$0xff] %vm255_vm0, %v1529_v50  ;;  %v1345_v60 = vsub.f32 1.5, %v1344_v13 }
 0x220   : > { %v1665_v61 = vpop.eup %1664  ;;  %v1531_v55 = vadd.f32 %v2460_v24, %v1508_v51  ;;  %v1279_v30 = vadd.f32 1e-05, %v1260_v32 }
 0x221   : > { %v1346_v31 = vmul.f32 %v1663_v11, %v1345_v60  ;;  %v1352_v37 = vmul.f32 %v1665_v61, %v1278_v22  ;;  %vm1358_vm5 = vweird.f32 %v1665_v61 }
 0x222   : > { %1550 = vst.msk [vmem:[%s2474_s16 + $0x20] sm:$0xff] %vm255_vm0, %v1531_v55  ;;  %1666 = vrsqrt.f32 %v1279_v30  ;;  %vm1359_vm7 = vmor %vm1357_vm6, %vm1358_vm5  ;;  %vm1367_vm9 = vweird.f32 %v1279_v30 }
 0x223   : > { %v1350_v52 = vsel %vm1349_vm4, %v1663_v11, %v1346_v31  ;;  %v1353_v47 = vmul.f32 %v1665_v61, %v1352_v37 }
 0x224   : > { %v1486_v58 = vmul.f32 %v1350_v52, %v2348_v59 }
 0x225   : > { %v1354_v17 = vmul.f32 0.5, %v1353_v47  ;;  %v1222_v16 = vpop.xlane.xlu0 %1221 }
 0x226   : > { %v1509_v41 = vmul.f32 %v2453_v27, %v1486_v58  ;;  %v1261_v21 = vmul.f32 %v1222_v16, %v2276_v26 }
 0x227   : > { %v1355_v62 = vsub.f32 1.5, %v1354_v17 }
 0x228   : > { %v1667_v56 = vpop.eup %1666  ;;  %v1532_v54 = vadd.f32 %v2460_v24, %v1509_v41  ;;  %v1280_v25 = vadd.f32 1e-05, %v1261_v21 }
 0x229   : > { %v1356_v2 = vmul.f32 %v1665_v61, %v1355_v62  ;;  %v1362_v15 = vmul.f32 %v1667_v56, %v1279_v30  ;;  %vm1368_vm8 = vweird.f32 %v1667_v56 }
 0x22a   : > { %1551 = vst.msk [vmem:[%s2474_s16 + $0x28] sm:$0xff] %vm255_vm0, %v1532_v54  ;;  %1668 = vrsqrt.f32 %v1280_v25  ;;  %vm1369_vm10 = vmor %vm1367_vm9, %vm1368_vm8  ;;  %vm1377_vm12 = vweird.f32 %v1280_v25 }
 0x22b   : > { %v1360_v59 = vsel %vm1359_vm7, %v1665_v61, %v1356_v2  ;;  %v1363_v42 = vmul.f32 %v1667_v56, %v1362_v15 }
 0x22c   : > { %v1487_v34 = vmul.f32 %v1360_v59, %v2356_v35 }
 0x22d   : > { %v1364_v36 = vmul.f32 0.5, %v1363_v42  ;;  %v1225_v14 = vpop.xlane.xlu1 %1224 }
 0x22e   : > { %v1510_v63 = vmul.f32 %v2453_v27, %v1487_v34  ;;  %v1262_v3 = vmul.f32 %v1225_v14, %v2276_v26 }
 0x22f   : > { %v1365_v45 = vsub.f32 1.5, %v1364_v36 }
 0x230   : > { %v1669_v7 = vpop.eup %1668  ;;  %v1533_v8 = vadd.f32 %v2460_v24, %v1510_v63  ;;  %v1281_v19 = vadd.f32 1e-05, %v1262_v3 }
 0x231   : > { %v1366_v20 = vmul.f32 %v1667_v56, %v1365_v45  ;;  %v1372_v33 = vmul.f32 %v1669_v7, %v1280_v25  ;;  %vm1378_vm11 = vweird.f32 %v1669_v7 }
 0x232   : > { %1552 = vst.msk [vmem:[%s2474_s16 + $0x30] sm:$0xff] %vm255_vm0, %v1533_v8  ;;  %1670 = vrsqrt.f32 %v1281_v19  ;;  %vm1379_vm13 = vmor %vm1377_vm12, %vm1378_vm11  ;;  %vm1387_vm15 = vweird.f32 %v1281_v19 }
 0x233   : > { %v1370_v35 = vsel %vm1369_vm10, %v1667_v56, %v1366_v20  ;;  %v1373_v11 = vmul.f32 %v1669_v7, %v1372_v33 }
 0x234   : > { %v1488_v9 = vmul.f32 %v1370_v35, %v2364_v23 }
 0x235   : > { %v1374_v48 = vmul.f32 0.5, %v1373_v11  ;;  %v1228_v22 = vpop.xlane.xlu2 %1227 }
 0x236   : > { %v1511_v44 = vmul.f32 %v2453_v27, %v1488_v9  ;;  %v1263_v46 = vmul.f32 %v1228_v22, %v2276_v26 }
 0x237   : > { %v1375_v18 = vsub.f32 1.5, %v1374_v48 }
 0x238   : > { %v1671_v43 = vpop.eup %1670  ;;  %v1534_v29 = vadd.f32 %v2460_v24, %v1511_v44  ;;  %v1282_v49 = vadd.f32 1e-05, %v1263_v46 }
 0x239   : > { %v1376_v6 = vmul.f32 %v1669_v7, %v1375_v18  ;;  %v1382_v50 = vmul.f32 %v1671_v43, %v1281_v19  ;;  %vm1388_vm14 = vweird.f32 %v1671_v43 }
 0x23a   : > { %1553 = vst.msk [vmem:[%s2474_s16 + $0x38] sm:$0xff] %vm255_vm0, %v1534_v29  ;;  %1672 = vrsqrt.f32 %v1282_v49  ;;  %vm1389_vm1 = vmor %vm1387_vm15, %vm1388_vm14  ;;  %vm1397_vm3 = vweird.f32 %v1282_v49 }
 0x23b   : > { %v1380_v23 = vsel %vm1379_vm13, %v1669_v7, %v1376_v6  ;;  %v1383_v13 = vmul.f32 %v1671_v43, %v1382_v50 }
 0x23c   : > { %v1489_v38 = vmul.f32 %v1380_v23, %v2372_v53 }
 0x23d   : > { %v1384_v51 = vmul.f32 0.5, %v1383_v13  ;;  %v1231_v32 = vpop.xlane.xlu0 %1230 }
 0x23e   : > { %v1512_v60 = vmul.f32 %v2453_v27, %v1489_v38  ;;  %v1264_v61 = vmul.f32 %v1231_v32, %v2276_v26 }
 0x23f   : > { %v1385_v55 = vsub.f32 1.5, %v1384_v51 }
 0x240   : > { %v1673_v30 = vpop.eup %1672  ;;  %v1535_v31 = vadd.f32 %v2460_v24, %v1512_v60  ;;  %v1283_v37 = vadd.f32 1e-05, %v1264_v61 }
 0x241   : > { %v1386_v52 = vmul.f32 %v1671_v43, %v1385_v55  ;;  %v1392_v47 = vmul.f32 %v1673_v30, %v1282_v49  ;;  %vm1398_vm2 = vweird.f32 %v1673_v30 }
 0x242   : > { %1554 = vst.msk [vmem:[%s2474_s16 + $0x40] sm:$0xff] %vm255_vm0, %v1535_v31  ;;  %1674 = vrsqrt.f32 %v1283_v37  ;;  %vm1399_vm4 = vmor %vm1397_vm3, %vm1398_vm2  ;;  %vm1407_vm6 = vweird.f32 %v1283_v37 }
 0x243   : > { %v1390_v53 = vsel %vm1389_vm1, %v1671_v43, %v1386_v52  ;;  %v1393_v58 = vmul.f32 %v1673_v30, %v1392_v47 }
 0x244   : > { %v1490_v17 = vmul.f32 %v1390_v53, %v2380_v5 }
 0x245   : > { %v1394_v16 = vmul.f32 0.5, %v1393_v58  ;;  %v1234_v41 = vpop.xlane.xlu1 %1233 }
 0x246   : > { %v1513_v21 = vmul.f32 %v2453_v27, %v1490_v17  ;;  %v1265_v62 = vmul.f32 %v1234_v41, %v2276_v26 }
 0x247   : > { %v1395_v56 = vsub.f32 1.5, %v1394_v16 }
 0x248   : > { %v1675_v54 = vpop.eup %1674  ;;  %v1536_v25 = vadd.f32 %v2460_v24, %v1513_v21  ;;  %v1284_v2 = vadd.f32 1e-05, %v1265_v62 }
 0x249   : > { %v1396_v15 = vmul.f32 %v1673_v30, %v1395_v56  ;;  %v1402_v59 = vmul.f32 %v1675_v54, %v1283_v37  ;;  %vm1408_vm5 = vweird.f32 %v1675_v54 }
 0x24a   : > { %1555 = vst.msk [vmem:[%s2474_s16 + $0x48] sm:$0xff] %vm255_vm0, %v1536_v25  ;;  %1676 = vrsqrt.f32 %v1284_v2  ;;  %vm1409_vm7 = vmor %vm1407_vm6, %vm1408_vm5  ;;  %vm1417_vm9 = vweird.f32 %v1284_v2 }
 0x24b   : > { %v1400_v5 = vsel %vm1399_vm4, %v1673_v30, %v1396_v15  ;;  %v1403_v42 = vmul.f32 %v1675_v54, %v1402_v59 }
 0x24c   : > { %v1491_v34 = vmul.f32 %v1400_v5, %v2388_v39 }
 0x24d   : > { %v1404_v36 = vmul.f32 0.5, %v1403_v42  ;;  %v1237_v14 = vpop.xlane.xlu2 %1236 }
 0x24e   : > { %v1514_v63 = vmul.f32 %v2453_v27, %v1491_v34  ;;  %v1266_v3 = vmul.f32 %v1237_v14, %v2276_v26 }
 0x24f   : > { %v1405_v45 = vsub.f32 1.5, %v1404_v36 }
 0x250   : > { %v1677_v7 = vpop.eup %1676  ;;  %v1537_v8 = vadd.f32 %v2460_v24, %v1514_v63  ;;  %v1285_v19 = vadd.f32 1e-05, %v1266_v3 }
 0x251   : > { %v1406_v20 = vmul.f32 %v1675_v54, %v1405_v45  ;;  %v1412_v33 = vmul.f32 %v1677_v7, %v1284_v2  ;;  %vm1418_vm8 = vweird.f32 %v1677_v7 }
 0x252   : > { %1556 = vst.msk [vmem:[%s2474_s16 + $0x50] sm:$0xff] %vm255_vm0, %v1537_v8  ;;  %1678 = vrsqrt.f32 %v1285_v19  ;;  %vm1419_vm10 = vmor %vm1417_vm9, %vm1418_vm8  ;;  %vm1427_vm12 = vweird.f32 %v1285_v19 }
 0x253   : > { %v1410_v39 = vsel %vm1409_vm7, %v1675_v54, %v1406_v20  ;;  %v1413_v35 = vmul.f32 %v1677_v7, %v1412_v33 }
 0x254   : > { %v1492_v11 = vmul.f32 %v1410_v39, %v2396_v1 }
 0x255   : > { %v1414_v9 = vmul.f32 0.5, %v1413_v35  ;;  %v1240_v48 = vpop.xlane.xlu0 %1239 }
 0x256   : > { %v1515_v22 = vmul.f32 %v2453_v27, %v1492_v11  ;;  %v1267_v44 = vmul.f32 %v1240_v48, %v2276_v26 }
 0x257   : > { %v1415_v46 = vsub.f32 1.5, %v1414_v9 }
 0x258   : > { %v1679_v18 = vpop.eup %1678  ;;  %v1538_v43 = vadd.f32 %v2460_v24, %v1515_v22  ;;  %v1286_v29 = vadd.f32 1e-05, %v1267_v44 }
 0x259   : > { %v1416_v49 = vmul.f32 %v1677_v7, %v1415_v46  ;;  %v1422_v6 = vmul.f32 %v1679_v18, %v1285_v19  ;;  %vm1428_vm11 = vweird.f32 %v1679_v18 }
 0x25a   : > { %1557 = vst.msk [vmem:[%s2474_s16 + $0x58] sm:$0xff] %vm255_vm0, %v1538_v43  ;;  %1680 = vrsqrt.f32 %v1286_v29  ;;  %vm1429_vm13 = vmor %vm1427_vm12, %vm1428_vm11  ;;  %vm1437_vm15 = vweird.f32 %v1286_v29 }
 0x25b   : > { %v1420_v1 = vsel %vm1419_vm10, %v1677_v7, %v1416_v49  ;;  %v1423_v50 = vmul.f32 %v1679_v18, %v1422_v6 }
 0x25c   : > { %v1493_v23 = vmul.f32 %v1420_v1, %v2404_v28 }
 0x25d   : > { %v1424_v13 = vmul.f32 0.5, %v1423_v50  ;;  %v1243_v38 = vpop.xlane.xlu1 %1242 }
 0x25e   : > { %v1516_v51 = vmul.f32 %v2453_v27, %v1493_v23  ;;  %v1268_v32 = vmul.f32 %v1243_v38, %v2276_v26 }
 0x25f   : > { %v1425_v60 = vsub.f32 1.5, %v1424_v13 }
 0x260   : > { %v1681_v61 = vpop.eup %1680  ;;  %v1539_v55 = vadd.f32 %v2460_v24, %v1516_v51  ;;  %v1287_v30 = vadd.f32 1e-05, %v1268_v32 }
 0x261   : > { %v1426_v31 = vmul.f32 %v1679_v18, %v1425_v60  ;;  %v1432_v37 = vmul.f32 %v1681_v61, %v1286_v29  ;;  %vm1438_vm14 = vweird.f32 %v1681_v61 }
 0x262   : > { %1558 = vst.msk [vmem:[%s2474_s16 + $0x60] sm:$0xff] %vm255_vm0, %v1539_v55  ;;  %1682 = vrsqrt.f32 %v1287_v30  ;;  %vm1439_vm1 = vmor %vm1437_vm15, %vm1438_vm14  ;;  %vm1447_vm3 = vweird.f32 %v1287_v30 }
 0x263   : > { %v1430_v28 = vsel %vm1429_vm13, %v1679_v18, %v1426_v31  ;;  %v1433_v52 = vmul.f32 %v1681_v61, %v1432_v37 }
 0x264   : > { %v1494_v47 = vmul.f32 %v1430_v28, %v2412_v10 }
 0x265   : > { %v1434_v53 = vmul.f32 0.5, %v1433_v52 }
 0x266   : > { %v1517_v58 = vmul.f32 %v2453_v27, %v1494_v47 }
 0x267   : > { %v1435_v17 = vsub.f32 1.5, %v1434_v53 }
 0x268   : > { %v1683_v16 = vpop.eup %1682  ;;  %v1540_v41 = vadd.f32 %v2460_v24, %v1517_v58  ;;  %v1246_v21 = vpop.xlane.xlu2 %1245 }
 0x269   : > { %v1436_v62 = vmul.f32 %v1681_v61, %v1435_v17  ;;  %v1442_v56 = vmul.f32 %v1683_v16, %v1287_v30  ;;  %v1269_v54 = vmul.f32 %v1246_v21, %v2276_v26  ;;  %vm1448_vm2 = vweird.f32 %v1683_v16 }
 0x26a   : > { %1559 = vst.msk [vmem:[%s2474_s16 + $0x68] sm:$0xff] %vm255_vm0, %v1540_v41  ;;  %vm1449_vm4 = vmor %vm1447_vm3, %vm1448_vm2 }
 0x26b   : > { %v1440_v25 = vsel %vm1439_vm1, %v1681_v61, %v1436_v62  ;;  %v1443_v10 = vmul.f32 %v1683_v16, %v1442_v56  ;;  %v1288_v2 = vadd.f32 1e-05, %v1269_v54 }
 0x26c   : > { %v1495_v15 = vmul.f32 %v1440_v25, %v2420_v0 }
 0x26d   : > { %v1444_v59 = vmul.f32 0.5, %v1443_v10  ;;  %1684 = vrsqrt.f32 %v1288_v2  ;;  %v1249_v5 = vpop.xlane.xlu0 %1248  ;;  %vm1457_vm6 = vweird.f32 %v1288_v2 }
 0x26e   : > { %v1518_v42 = vmul.f32 %v2453_v27, %v1495_v15  ;;  %v1270_v34 = vmul.f32 %v1249_v5, %v2276_v26 }
 0x26f   : > { %v1445_v36 = vsub.f32 1.5, %v1444_v59 }
 0x270   : > { %v1541_v14 = vadd.f32 %v2460_v24, %v1518_v42  ;;  %v1289_v63 = vadd.f32 1e-05, %v1270_v34 }
 0x271   : > { %v1446_v3 = vmul.f32 %v1683_v16, %v1445_v36 }
 0x272   : > { %1560 = vst.msk [vmem:[%s2474_s16 + $0x70] sm:$0xff] %vm255_vm0, %v1541_v14  ;;  %1686 = vrsqrt.f32 %v1289_v63  ;;  %vm1467_vm9 = vweird.f32 %v1289_v63 }
 0x273   : > { %v1685_v0 = vpop.eup %1684  ;;  %v1450_v45 = vsel %vm1449_vm4, %v1683_v16, %v1446_v3 }
 0x274   : > { %v1496_v7 = vmul.f32 %v1450_v45, %v2428_v57  ;;  %v1452_v8 = vmul.f32 %v1685_v0, %v1288_v2  ;;  %vm1458_vm5 = vweird.f32 %v1685_v0 }
 0x275   : > { %v1252_v19 = vpop.xlane.xlu1 %1251  ;;  %vm1459_vm7 = vmor %vm1457_vm6, %vm1458_vm5 }
 0x276   : > { %v1519_v20 = vmul.f32 %v2453_v27, %v1496_v7  ;;  %v1453_v33 = vmul.f32 %v1685_v0, %v1452_v8  ;;  %v1271_v39 = vmul.f32 %v1252_v19, %v2276_v26 }
 0x278   : > { %v1687_v35 = vpop.eup %1686  ;;  %v1542_v11 = vadd.f32 %v2460_v24, %v1519_v20  ;;  %v1454_v9 = vmul.f32 0.5, %v1453_v33  ;;  %v1290_v48 = vadd.f32 1e-05, %v1271_v39 }
 0x279   : > { %v1462_v22 = vmul.f32 %v1687_v35, %v1289_v63  ;;  %vm1468_vm8 = vweird.f32 %v1687_v35 }
 0x27a   : > { %1561 = vst.msk [vmem:[%s2474_s16 + $0x78] sm:$0xff] %vm255_vm0, %v1542_v11  ;;  %v1455_v44 = vsub.f32 1.5, %v1454_v9  ;;  %1688 = vrsqrt.f32 %v1290_v48  ;;  %vm1469_vm10 = vmor %vm1467_vm9, %vm1468_vm8  ;;  %vm1477_vm12 = vweird.f32 %v1290_v48 }
 0x27b   : > { %v1463_v46 = vmul.f32 %v1687_v35, %v1462_v22 }
 0x27c   : > { %v1456_v57 = vmul.f32 %v1685_v0, %v1455_v44 }
 0x27d   : > { %v1464_v18 = vmul.f32 0.5, %v1463_v46 }
 0x27e   : > { %v1460_v43 = vsel %vm1459_vm7, %v1685_v0, %v1456_v57 }
 0x27f   : > { %v1497_v26 = vmul.f32 %v1460_v43, %v2437_v12  ;;  %v1465_v29 = vsub.f32 1.5, %v1464_v18 }
 0x280   : > { %v1689_v49 = vpop.eup %1688 }
 0x281   : > { %v1520_v6 = vmul.f32 %v2453_v27, %v1497_v26  ;;  %v1466_v1 = vmul.f32 %v1687_v35, %v1465_v29  ;;  %v1472_v50 = vmul.f32 %v1689_v49, %v1290_v48  ;;  %vm1478_vm11 = vweird.f32 %v1689_v49 }
 0x282   : > { %vm1479_vm13 = vmor %vm1477_vm12, %vm1478_vm11 }
 0x283   : > { %v1543_v23 = vadd.f32 %v2460_v24, %v1520_v6  ;;  %v1470_v13 = vsel %vm1469_vm10, %v1687_v35, %v1466_v1  ;;  %v1473_v38 = vmul.f32 %v1689_v49, %v1472_v50 }
 0x284   : > { %v1498_v51 = vmul.f32 %v1470_v13, %v2445_v4 }
 0x285   : > { %1562 = vst.msk [vmem:[%s2474_s16 + $0x80] sm:$0xff] %vm255_vm0, %v1543_v23  ;;  %v1474_v12 = vmul.f32 0.5, %v1473_v38 }
 0x286   : > { %v1521_v32 = vmul.f32 %v2453_v27, %v1498_v51 }
 0x287   : > { %v1475_v60 = vsub.f32 1.5, %v1474_v12 }
 0x288   : > { %v1544_v61 = vadd.f32 %v2460_v24, %v1521_v32 }
 0x289   : > { %v1476_v55 = vmul.f32 %v1689_v49, %v1475_v60 }
 0x28a   : > { %1563 = vst.msk [vmem:[%s2474_s16 + $0x88] sm:$0xff] %vm255_vm0, %v1544_v61 }
 0x28b   : > { %v1480_v30 = vsel %vm1479_vm13, %v1689_v49, %v1476_v55 }
 0x28c   : > { %v1499_v31 = vmul.f32 %v1480_v30, %v2465_v40 }
 0x28e   : > { %v1522_v37 = vmul.f32 %v2453_v27, %v1499_v31 }
 0x290   : > { %v1545_v4 = vadd.f32 %v2460_v24, %v1522_v37 }
 0x292   : > { %1564 = vst.msk [vmem:[%s2474_s16 + $0x90] sm:$0xff] %vm255_vm0, %v1545_v4 }
 0x293 PF: > { %s15_s18 = sadd.s32 1, %s1696_s18  }
 0x294   : > { %p12_p4 = scmp.ge.s32.totalorder %s15_s18, 4  }
 0x296   :  { %14 = sbr.rel (!%p12_p4) target bundleno = 1 (0x1), region = 70 }

</bundles_post_ra>
